<compile_context>
chip_gen: v6e
topology: v6e:2x2x1
jax: 0.10.0
libtpu: 0.0.40
codegen_flags: <defaults>
</compile_context>

<pallas_src>
import functools
import math

import jax
import jax.numpy as jnp
from jax.experimental import pallas as pl
from jax.experimental.pallas import tpu as pltpu


def _layer_norm(x_f32, g, b, eps=1e-5):
    # x_f32: (M, E) float32; g, b: (1, E) float32 — stats kept in f32.
    mu = jnp.mean(x_f32, axis=-1, keepdims=True)
    var = jnp.mean((x_f32 - mu) ** 2, axis=-1, keepdims=True)
    return (x_f32 - mu) * jax.lax.rsqrt(var + eps) * g + b


# ---------------------------------------------------------------------------
# Fused kernel: all transformer layers + final LN + value head + mean over T.
# Grid = (B/Bblk, L); batch-blocks parallel, layer sequential (residual in VMEM scratch).
# ---------------------------------------------------------------------------
def gpt_reward_kernel(x_ref, mask_ref,
                      ln1_g_ref, ln1_b_ref, wqkv_ref, bqkv_ref,
                      wproj_ref, bproj_ref,
                      ln2_g_ref, ln2_b_ref, wfc_ref, bfc_ref,
                      wout_ref, bout_ref,
                      lnf_g_ref, lnf_b_ref, wv_ref,
                      o_ref,
                      act_ref, causal_ref, padb_ref,
                      *, n_head, block_kv):
    l = pl.program_id(1)
    n_layer = pl.num_programs(1)

    Bblk, T, E = act_ref.shape
    BT = Bblk * T
    hd = E // n_head
    n_kv = T // block_kv
    scale = 1.0 / math.sqrt(hd)

    # Layer 0 for this batch block: load embeddings into the resident residual stream and
    # build the additive attention biases ONCE (reused by every layer of this block).
    @pl.when(l == 0)
    def _():
        act_ref[...] = x_ref[...].astype(jnp.float32)
        row = jax.lax.broadcasted_iota(jnp.int32, (T, T), 0)
        col = jax.lax.broadcasted_iota(jnp.int32, (T, T), 1)
        causal_ref[...] = jnp.where(col <= row, 0.0, -1e9).astype(jnp.float32)
        padb_ref[...] = (mask_ref[...] - 1.0) * 1e9          # 0 = attend, -1e9 = padded key

    x = act_ref[...].reshape(BT, E)                          # (Bblk*T, E) f32 residual stream

    # --- self-attention (pre-LN) ------------------------------------------------------
    h = _layer_norm(x, ln1_g_ref[...], ln1_b_ref[...]).astype(jnp.bfloat16)
    qkv = jnp.dot(h, wqkv_ref[...],
                  preferred_element_type=jnp.float32) + bqkv_ref[...]       # (BT, 3E) f32
    wproj = wproj_ref[...]                                                  # (E, E) bf16

    attn = jnp.zeros((BT, E), jnp.float32)
    for hh in range(n_head):                    # static head loop: lane slices, no transposes
        q_sl = slice(hh * hd, (hh + 1) * hd)
        qh = qkv[:, q_sl].reshape(Bblk, T, hd).astype(jnp.bfloat16)
        kh = qkv[:, E + hh * hd: E + (hh + 1) * hd].reshape(Bblk, T, hd).astype(jnp.bfloat16)
        vh = qkv[:, 2 * E + hh * hd: 2 * E + (hh + 1) * hd].reshape(Bblk, T, hd).astype(jnp.bfloat16)

        # flash-style online softmax over KV tiles (static unroll; n_kv is compile-time).
        m_i = jnp.full((Bblk, T, 1), -1e30, jnp.float32)
        l_i = jnp.zeros((Bblk, T, 1), jnp.float32)
        acc = jnp.zeros((Bblk, T, hd), jnp.float32)
        for kt in range(n_kv):
            ks = kt * block_kv
            k_t = kh[:, ks:ks + block_kv, :]                                # (Bblk, TK, hd)
            v_t = vh[:, ks:ks + block_kv, :]
            # additive causal + key-padding bias, sliced from the precomputed scratches.
            bias_t = (causal_ref[:, ks:ks + block_kv][None, :, :]
                      + padb_ref[:, :, ks:ks + block_kv])                   # (Bblk, T, TK)
            s = jnp.einsum('bqd,bkd->bqk', qh, k_t,
                           preferred_element_type=jnp.float32) * scale + bias_t
            m_new = jnp.maximum(m_i, jnp.max(s, axis=-1, keepdims=True))
            alpha = jnp.exp(m_i - m_new)
            p = jnp.exp(s - m_new)
            l_i = alpha * l_i + jnp.sum(p, axis=-1, keepdims=True)
            acc = alpha * acc + jnp.einsum('bqk,bkd->bqd', p.astype(jnp.bfloat16), v_t,
                                           preferred_element_type=jnp.float32)
            m_i = m_new

        ctx = (acc * pl.reciprocal(l_i, approx=True)).astype(jnp.bfloat16)  # (Bblk, T, hd)
        # per-head output projection, accumulated — avoids the (H,T,hd)->(T,E) relayout.
        attn = attn + jnp.dot(ctx.reshape(BT, hd), wproj[q_sl, :],
                              preferred_element_type=jnp.float32)

    x = x + attn + bproj_ref[...]

    # --- MLP (pre-LN) -------------------------------------------------------------------
    # TODO(synk): tile the 4E dimension (column-tile wfc, K-tile wout) for v7x VMEM fit at
    #             real GPT-2 sizes.
    h2 = _layer_norm(x, ln2_g_ref[...], ln2_b_ref[...]).astype(jnp.bfloat16)
    h2 = jnp.dot(h2, wfc_ref[...],
                 preferred_element_type=jnp.float32) + bfc_ref[...]
    h2 = jax.nn.gelu(h2, approximate=True).astype(jnp.bfloat16)             # GPT-2 "gelu_new"
    h2 = jnp.dot(h2, wout_ref[...],
                 preferred_element_type=jnp.float32) + bout_ref[...]
    x = x + h2

    act_ref[...] = x.reshape(Bblk, T, E)                                    # carry to next layer

    # --- final LayerNorm + value head + mean over T, fused into the last layer step -----
    @pl.when(l == n_layer - 1)
    def _():
        hf = _layer_norm(x, lnf_g_ref[...], lnf_b_ref[...])                 # (BT, E) f32
        vals = jnp.sum(hf * wv_ref[...], axis=-1, keepdims=True)            # (BT, 1) == hf @ wv.T
        o_ref[...] = jnp.mean(vals.reshape(Bblk, T, 1), axis=1, keepdims=True)   # (Bblk, 1, 1)


def _largest_divisor_leq(n, cap):
    d = max(1, min(n, cap))
    while n % d:
        d -= 1
    return d


def _vmem_limit_bytes():
    # Generation-aware VMEM budget with headroom (v7x 64 MiB -> ~54 MiB; v5e/v6e 128 -> ~108).
    # TODO(synk): at real sizes, derive the budget from the actual tile footprint instead.
    try:
        return int(pltpu.get_tpu_info().vmem_capacity_bytes * 0.85)
    except Exception:
        return None


def gpt_reward_pallas(x, mask3, params, *, block_b=None, block_kv=None):
    """x: (B, T, E) bf16 embeddings; mask3: (B, 1, T) f32; returns (B, 1) f32 scores."""
    B, T, E = x.shape
    L = params['wqkv'].shape[0]
    n_head = params['n_head']

    # Batch block: amortizes per-layer weight DMA over block_b rows and widens matmul M.
    # (On v7x keep B/block_b >= 2 so both TensorCores are fed.)
    if block_b is None:
        block_b = _largest_divisor_leq(B, 8)
    if block_kv is None:
        block_kv = _largest_divisor_leq(T, 128)
    assert B % block_b == 0 and T % block_kv == 0

    layer_names = ['ln1_g', 'ln1_b', 'wqkv', 'bqkv', 'wproj', 'bproj',
                   'ln2_g', 'ln2_b', 'wfc', 'bfc', 'wout', 'bout']
    layer_ws = [params[n] for n in layer_names]          # each (L, ..., ...)
    final_ws = [params['lnf_g'], params['lnf_b'], params['wv']]

    def layer_spec(w):
        # Leading layer dim squeezed; block index follows the layer grid axis → weights stream
        # (double-buffered) and are now shared by all block_b rows of the batch block.
        return pl.BlockSpec((None,) + w.shape[1:], lambda nb, l: (l, 0, 0))

    def const_spec(w):
        return pl.BlockSpec(w.shape, lambda nb, l: (0, 0))

    in_specs = (
        [pl.BlockSpec((block_b, T, E), lambda nb, l: (nb, 0, 0)),   # embeddings (batch block)
         pl.BlockSpec((block_b, 1, T), lambda nb, l: (nb, 0, 0))]   # attention mask
        + [layer_spec(w) for w in layer_ws]
        + [const_spec(w) for w in final_ws]
    )

    compiler_kwargs = dict(dimension_semantics=("parallel", "arbitrary"))
    vmem_limit = _vmem_limit_bytes()
    if vmem_limit is not None:
        compiler_kwargs["vmem_limit_bytes"] = vmem_limit

    out = pl.pallas_call(
        functools.partial(gpt_reward_kernel, n_head=n_head, block_kv=block_kv),
        out_shape=jax.ShapeDtypeStruct((B, 1, 1), jnp.float32),
        grid=(B // block_b, L),
        in_specs=in_specs,
        out_specs=pl.BlockSpec((block_b, 1, 1), lambda nb, l: (nb, 0, 0)),
        scratch_shapes=[
            pltpu.VMEM((block_b, T, E), jnp.float32),   # resident residual stream
            pltpu.VMEM((T, T), jnp.float32),            # additive causal bias (built once)
            pltpu.VMEM((block_b, 1, T), jnp.float32),   # additive key-padding bias
        ],
        compiler_params=pltpu.CompilerParams(**compiler_kwargs),
    )(x, mask3, *layer_ws, *final_ws)
    return out.reshape(B, 1)


# ---------------------------------------------------------------------------
# Parameters + full forward (glue)
# ---------------------------------------------------------------------------
def init_params(key, *, vocab, max_pos, n_layer, n_head, E):
    F = 4 * E

    def init(k, shape, dtype=jnp.bfloat16):
        return (0.02 * jax.random.normal(k, shape, dtype=jnp.float32)).astype(dtype)

    keys = iter(jax.random.split(key, 3 + 4 * n_layer))   # wte, wpe, wv + 4 weights per layer

    params = {
        'wte': init(next(keys), (vocab, E)),               # bf16
        'wpe': init(next(keys), (max_pos, E)),             # bf16
        'lnf_g': jnp.ones((1, E), jnp.float32),
        'lnf_b': jnp.zeros((1, E), jnp.float32),
        'wv': init(next(keys), (1, E), jnp.float32),       # nn.Linear(E, 1, bias=False).weight
        'n_head': n_head,
    }

    wqkv, wproj, wfc, wout = [], [], [], []
    for _ in range(n_layer):
        wqkv.append(init(next(keys), (E, 3 * E)))
        wproj.append(init(next(keys), (E, E)))
        wfc.append(init(next(keys), (E, F)))
        wout.append(init(next(keys), (F, E)))

    params.update({
        'ln1_g': jnp.ones((n_layer, 1, E), jnp.float32),
        'ln1_b': jnp.zeros((n_layer, 1, E), jnp.float32),
        'wqkv': jnp.stack(wqkv),                           # (L, E, 3E) bf16
        'bqkv': jnp.zeros((n_layer, 1, 3 * E), jnp.float32),
        'wproj': jnp.stack(wproj),                         # (L, E, E)  bf16
        'bproj': jnp.zeros((n_layer, 1, E), jnp.float32),
        'ln2_g': jnp.ones((n_layer, 1, E), jnp.float32),
        'ln2_b': jnp.zeros((n_layer, 1, E), jnp.float32),
        'wfc': jnp.stack(wfc),                             # (L, E, 4E) bf16
        'bfc': jnp.zeros((n_layer, 1, F), jnp.float32),
        'wout': jnp.stack(wout),                           # (L, 4E, E) bf16
        'bout': jnp.zeros((n_layer, 1, E), jnp.float32),
    })
    return params


def hf_gpt_reward_forward(params, input_ids, attention_mask):
    """score = value_head(backbone(input_ids, attention_mask).last_hidden_state).mean(dim=1)"""
    B, T = input_ids.shape
    # token + position embeddings (glue JAX gather)
    h = (params['wte'][input_ids].astype(jnp.float32)
         + params['wpe'][:T][None, :, :].astype(jnp.float32)).astype(jnp.bfloat16)   # (B,T,E)
    mask3 = attention_mask.astype(jnp.float32).reshape(B, 1, T)
    return gpt_reward_pallas(h, mask3, params)                                        # (B, 1)


if __name__ == "__main__":
    B, T, E, H, L, V, MAXPOS = 2, 8, 32, 4, 2, 64, 16

    key = jax.random.PRNGKey(0)
    k_param, k_ids = jax.random.split(key)
    params = init_params(k_param, vocab=V, max_pos=MAXPOS, n_layer=L, n_head=H, E=E)

    input_ids = jax.random.randint(k_ids, (B, T), 0, V, dtype=jnp.int32)
    attention_mask = jnp.ones((B, T), jnp.float32).at[1, -2:].set(0.0)   # right-pad batch row 1

    score = hf_gpt_reward_forward(params, input_ids, attention_mask)
    score = jax.block_until_ready(score)

    assert score.shape == (B, 1), score.shape
    assert bool(jnp.all(jnp.isfinite(score)))
    print("KERNEL_OK")
</pallas_src>

<mosaic_0001>
module attributes {stable_mosaic.version = 11 : i64} {
  func.func @gpt_reward_kernel(%arg0: i32, %arg1: i32, %arg2: memref<2x8x32xbf16, #tpu.memory_space<vmem>>, %arg3: memref<2x1x8xf32, #tpu.memory_space<vmem>>, %arg4: memref<1x1x32xf32, #tpu.memory_space<vmem>>, %arg5: memref<1x1x32xf32, #tpu.memory_space<vmem>>, %arg6: memref<1x32x96xbf16, #tpu.memory_space<vmem>>, %arg7: memref<1x1x96xf32, #tpu.memory_space<vmem>>, %arg8: memref<1x32x32xbf16, #tpu.memory_space<vmem>>, %arg9: memref<1x1x32xf32, #tpu.memory_space<vmem>>, %arg10: memref<1x1x32xf32, #tpu.memory_space<vmem>>, %arg11: memref<1x1x32xf32, #tpu.memory_space<vmem>>, %arg12: memref<1x32x128xbf16, #tpu.memory_space<vmem>>, %arg13: memref<1x1x128xf32, #tpu.memory_space<vmem>>, %arg14: memref<1x128x32xbf16, #tpu.memory_space<vmem>>, %arg15: memref<1x1x32xf32, #tpu.memory_space<vmem>>, %arg16: memref<1x32xf32, #tpu.memory_space<vmem>>, %arg17: memref<1x32xf32, #tpu.memory_space<vmem>>, %arg18: memref<1x32xf32, #tpu.memory_space<vmem>>, %arg19: memref<2x1x1xf32, #tpu.memory_space<vmem>>, %arg20: memref<2x8x32xf32, #tpu.memory_space<vmem>>, %arg21: memref<8x8xf32, #tpu.memory_space<vmem>>, %arg22: memref<2x1x8xf32, #tpu.memory_space<vmem>>) attributes {dimension_semantics = [#tpu.dimension_semantics<parallel>, #tpu.dimension_semantics<arbitrary>], iteration_bounds = array<i64: 1, 2>, scalar_prefetch = 0 : i64, scratch_operands = 3 : i64, tpu.core_type = #tpu.core_type<tc>, window_params = [{transform_indices = @transform_0, window_bounds = array<i64: 2, 8, 32>}, {transform_indices = @transform_1, window_bounds = array<i64: 2, 1, 8>}, {transform_indices = @transform_2, window_bounds = array<i64: 1, 1, 32>}, {transform_indices = @transform_3, window_bounds = array<i64: 1, 1, 32>}, {transform_indices = @transform_4, window_bounds = array<i64: 1, 32, 96>}, {transform_indices = @transform_5, window_bounds = array<i64: 1, 1, 96>}, {transform_indices = @transform_6, window_bounds = array<i64: 1, 32, 32>}, {transform_indices = @transform_7, window_bounds = array<i64: 1, 1, 32>}, {transform_indices = @transform_8, window_bounds = array<i64: 1, 1, 32>}, {transform_indices = @transform_9, window_bounds = array<i64: 1, 1, 32>}, {transform_indices = @transform_10, window_bounds = array<i64: 1, 32, 128>}, {transform_indices = @transform_11, window_bounds = array<i64: 1, 1, 128>}, {transform_indices = @transform_12, window_bounds = array<i64: 1, 128, 32>}, {transform_indices = @transform_13, window_bounds = array<i64: 1, 1, 32>}, {pipeline_mode = #tpu.pipeline_mode<synchronous>, transform_indices = @transform_14, window_bounds = array<i64: 1, 32>}, {pipeline_mode = #tpu.pipeline_mode<synchronous>, transform_indices = @transform_15, window_bounds = array<i64: 1, 32>}, {pipeline_mode = #tpu.pipeline_mode<synchronous>, transform_indices = @transform_16, window_bounds = array<i64: 1, 32>}, {transform_indices = @transform_17, window_bounds = array<i64: 2, 1, 1>}]} {
    %c0_i32 = arith.constant 0 : i32
    %0 = arith.cmpi eq, %arg1, %c0_i32 : i32
    %1 = arith.extui %0 : i1 to i32
    %c0_i32_0 = arith.constant 0 : i32
    %2 = arith.cmpi ne, %1, %c0_i32_0 : i32
    scf.if %2 {
      %c0_116 = arith.constant 0 : index
      %c0_117 = arith.constant 0 : index
      %c0_118 = arith.constant 0 : index
      %296 = vector.load %arg2[%c0_116, %c0_117, %c0_118] : memref<2x8x32xbf16, #tpu.memory_space<vmem>>, vector<2x8x32xbf16>
      %297 = arith.extf %296 : vector<2x8x32xbf16> to vector<2x8x32xf32>
      %c0_119 = arith.constant 0 : index
      %c0_120 = arith.constant 0 : index
      %c0_121 = arith.constant 0 : index
      %298 = vector.load %arg20[%c0_119, %c0_120, %c0_121] : memref<2x8x32xf32, #tpu.memory_space<vmem>>, vector<2x8x32xf32>
      tpu.vector_store %arg20[%c0_119, %c0_120, %c0_121], %297 {strides = array<i32>} : memref<2x8x32xf32, #tpu.memory_space<vmem>>, vector<2x8x32xf32>,
      %299 = tpu.iota {dimensions = array<i32: 0>} : vector<8x8xi32>
      %300 = tpu.iota {dimensions = array<i32: 1>} : vector<8x8xi32>
      %301 = arith.cmpi sle, %300, %299 : vector<8x8xi32>
      %cst_122 = arith.constant 0.000000e+00 : f32
      %cst_123 = arith.constant -1.000000e+09 : f32
      %302 = vector.broadcast %cst_122 : f32 to vector<8x8xf32>
      %303 = vector.broadcast %cst_123 : f32 to vector<8x8xf32>
      %304 = arith.select %301, %302, %303 : vector<8x8xi1>, vector<8x8xf32>
      %c0_124 = arith.constant 0 : index
      %c0_125 = arith.constant 0 : index
      %305 = vector.load %arg21[%c0_124, %c0_125] : memref<8x8xf32, #tpu.memory_space<vmem>>, vector<8x8xf32>
      tpu.vector_store %arg21[%c0_124, %c0_125], %304 {strides = array<i32>} : memref<8x8xf32, #tpu.memory_space<vmem>>, vector<8x8xf32>,
      %c0_126 = arith.constant 0 : index
      %c0_127 = arith.constant 0 : index
      %c0_128 = arith.constant 0 : index
      %306 = vector.load %arg3[%c0_126, %c0_127, %c0_128] : memref<2x1x8xf32, #tpu.memory_space<vmem>>, vector<2x1x8xf32>
      %cst_129 = arith.constant 1.000000e+00 : f32
      %307 = vector.broadcast %cst_129 : f32 to vector<2x1x8xf32>
      %308 = arith.subf %306, %307 : vector<2x1x8xf32>
      %cst_130 = arith.constant 1.000000e+09 : f32
      %309 = vector.broadcast %cst_130 : f32 to vector<2x1x8xf32>
      %310 = arith.mulf %308, %309 : vector<2x1x8xf32>
      %c0_131 = arith.constant 0 : index
      %c0_132 = arith.constant 0 : index
      %c0_133 = arith.constant 0 : index
      %311 = vector.load %arg22[%c0_131, %c0_132, %c0_133] : memref<2x1x8xf32, #tpu.memory_space<vmem>>, vector<2x1x8xf32>
      tpu.vector_store %arg22[%c0_131, %c0_132, %c0_133], %310 {strides = array<i32>} : memref<2x1x8xf32, #tpu.memory_space<vmem>>, vector<2x1x8xf32>,
    } else {
    }
    %c0 = arith.constant 0 : index
    %c0_1 = arith.constant 0 : index
    %c0_2 = arith.constant 0 : index
    %3 = vector.load %arg20[%c0, %c0_1, %c0_2] : memref<2x8x32xf32, #tpu.memory_space<vmem>>, vector<2x8x32xf32>
    %4 = vector.shape_cast %3 : vector<2x8x32xf32> to vector<16x32xf32>
    %c0_3 = arith.constant 0 : index
    %c0_4 = arith.constant 0 : index
    %c0_5 = arith.constant 0 : index
    %5 = vector.load %arg4[%c0_3, %c0_4, %c0_5] : memref<1x1x32xf32, #tpu.memory_space<vmem>>, vector<1x1x32xf32>
    %6 = vector.shape_cast %5 : vector<1x1x32xf32> to vector<1x32xf32>
    %c0_6 = arith.constant 0 : index
    %c0_7 = arith.constant 0 : index
    %c0_8 = arith.constant 0 : index
    %7 = vector.load %arg5[%c0_6, %c0_7, %c0_8] : memref<1x1x32xf32, #tpu.memory_space<vmem>>, vector<1x1x32xf32>
    %8 = vector.shape_cast %7 : vector<1x1x32xf32> to vector<1x32xf32>
    %cst = arith.constant dense<0.000000e+00> : vector<16xf32>
    %9 = vector.multi_reduction <add>, %4, %cst [1] : vector<16x32xf32> to vector<16xf32>
    %10 = vector.shape_cast %9 : vector<16xf32> to vector<16x1xf32>
    %cst_9 = arith.constant 3.200000e+01 : f32
    %11 = vector.broadcast %cst_9 : f32 to vector<16x1xf32>
    %12 = arith.divf %10, %11 : vector<16x1xf32>
    %13 = vector.broadcast %12 : vector<16x1xf32> to vector<16x32xf32>
    %14 = arith.subf %4, %13 : vector<16x32xf32>
    %15 = arith.mulf %14, %14 : vector<16x32xf32>
    %cst_10 = arith.constant dense<0.000000e+00> : vector<16xf32>
    %16 = vector.multi_reduction <add>, %15, %cst_10 [1] : vector<16x32xf32> to vector<16xf32>
    %17 = vector.shape_cast %16 : vector<16xf32> to vector<16x1xf32>
    %cst_11 = arith.constant 3.200000e+01 : f32
    %18 = vector.broadcast %cst_11 : f32 to vector<16x1xf32>
    %19 = arith.divf %17, %18 : vector<16x1xf32>
    %20 = vector.broadcast %12 : vector<16x1xf32> to vector<16x32xf32>
    %21 = arith.subf %4, %20 : vector<16x32xf32>
    %cst_12 = arith.constant 9.99999974E-6 : f32
    %22 = vector.broadcast %cst_12 : f32 to vector<16x1xf32>
    %23 = arith.addf %19, %22 : vector<16x1xf32>
    %24 = math.rsqrt %23 : vector<16x1xf32>
    %25 = vector.broadcast %24 : vector<16x1xf32> to vector<16x32xf32>
    %26 = arith.mulf %21, %25 : vector<16x32xf32>
    %27 = vector.broadcast %6 : vector<1x32xf32> to vector<16x32xf32>
    %28 = arith.mulf %26, %27 : vector<16x32xf32>
    %29 = vector.broadcast %8 : vector<1x32xf32> to vector<16x32xf32>
    %30 = arith.addf %28, %29 : vector<16x32xf32>
    %31 = arith.truncf %30 : vector<16x32xf32> to vector<16x32xbf16>
    %c0_13 = arith.constant 0 : index
    %c0_14 = arith.constant 0 : index
    %c0_15 = arith.constant 0 : index
    %32 = vector.load %arg6[%c0_13, %c0_14, %c0_15] : memref<1x32x96xbf16, #tpu.memory_space<vmem>>, vector<1x32x96xbf16>
    %33 = vector.shape_cast %32 : vector<1x32x96xbf16> to vector<32x96xbf16>
    %cst_16 = arith.constant dense<0.000000e+00> : vector<16x96xf32>
    %34 = tpu.matmul %31, %33, %cst_16 {dimension_numbers = #tpu.dot_dimension_numbers<[1], [0], [0], [1], [0, 0, 1, 1], [], []>} : vector<16x32xbf16>, vector<32x96xbf16>, vector<16x96xf32> -> vector<16x96xf32>
    %c0_17 = arith.constant 0 : index
    %c0_18 = arith.constant 0 : index
    %c0_19 = arith.constant 0 : index
    %35 = vector.load %arg7[%c0_17, %c0_18, %c0_19] : memref<1x1x96xf32, #tpu.memory_space<vmem>>, vector<1x1x96xf32>
    %36 = vector.shape_cast %35 : vector<1x1x96xf32> to vector<1x96xf32>
    %37 = vector.broadcast %36 : vector<1x96xf32> to vector<16x96xf32>
    %38 = arith.addf %34, %37 : vector<16x96xf32>
    %c0_20 = arith.constant 0 : index
    %c0_21 = arith.constant 0 : index
    %c0_22 = arith.constant 0 : index
    %39 = vector.load %arg8[%c0_20, %c0_21, %c0_22] : memref<1x32x32xbf16, #tpu.memory_space<vmem>>, vector<1x32x32xbf16>
    %40 = vector.shape_cast %39 : vector<1x32x32xbf16> to vector<32x32xbf16>
    %cst_23 = arith.constant 0.000000e+00 : f32
    %41 = vector.broadcast %cst_23 : f32 to vector<16x32xf32>
    %42 = vector.extract_strided_slice %38 {offsets = [0, 0], sizes = [16, 8], strides = [1, 1]} : vector<16x96xf32> to vector<16x8xf32>
    %43 = vector.shape_cast %42 : vector<16x8xf32> to vector<2x8x8xf32>
    %44 = arith.truncf %43 : vector<2x8x8xf32> to vector<2x8x8xbf16>
    %45 = vector.extract_strided_slice %38 {offsets = [0, 32], sizes = [16, 8], strides = [1, 1]} : vector<16x96xf32> to vector<16x8xf32>
    %46 = vector.shape_cast %45 : vector<16x8xf32> to vector<2x8x8xf32>
    %47 = arith.truncf %46 : vector<2x8x8xf32> to vector<2x8x8xbf16>
    %48 = vector.extract_strided_slice %38 {offsets = [0, 64], sizes = [16, 8], strides = [1, 1]} : vector<16x96xf32> to vector<16x8xf32>
    %49 = vector.shape_cast %48 : vector<16x8xf32> to vector<2x8x8xf32>
    %50 = arith.truncf %49 : vector<2x8x8xf32> to vector<2x8x8xbf16>
    %cst_24 = arith.constant -1.000000e+30 : f32
    %51 = vector.broadcast %cst_24 : f32 to vector<2x8x1xf32>
    %cst_25 = arith.constant 0.000000e+00 : f32
    %52 = vector.broadcast %cst_25 : f32 to vector<2x8x1xf32>
    %cst_26 = arith.constant 0.000000e+00 : f32
    %53 = vector.broadcast %cst_26 : f32 to vector<2x8x8xf32>
    %c0_27 = arith.constant 0 : index
    %c0_28 = arith.constant 0 : index
    %54 = vector.load %arg21[%c0_27, %c0_28] : memref<8x8xf32, #tpu.memory_space<vmem>>, vector<8x8xf32>
    %55 = vector.shape_cast %54 : vector<8x8xf32> to vector<1x8x8xf32>
    %c0_29 = arith.constant 0 : index
    %c0_30 = arith.constant 0 : index
    %c0_31 = arith.constant 0 : index
    %56 = vector.load %arg22[%c0_29, %c0_30, %c0_31] : memref<2x1x8xf32, #tpu.memory_space<vmem>>, vector<2x1x8xf32>
    %57 = vector.broadcast %55 : vector<1x8x8xf32> to vector<2x8x8xf32>
    %58 = vector.broadcast %56 : vector<2x1x8xf32> to vector<2x8x8xf32>
    %59 = arith.addf %57, %58 : vector<2x8x8xf32>
    "tpu.trace_start"() <{level = 10 : i32, message = "bqd,bkd->bqk"}> : () -> ()
    %cst_32 = arith.constant dense<0.000000e+00> : vector<2x8x8xf32>
    %60 = tpu.matmul %44, %47, %cst_32 {dimension_numbers = #tpu.dot_dimension_numbers<[2], [2], [1], [1], [0, 0, 0, 1, 1, 1], [0], [0]>} : vector<2x8x8xbf16>, vector<2x8x8xbf16>, vector<2x8x8xf32> -> vector<2x8x8xf32>
    "tpu.trace_stop"() : () -> ()
    %cst_33 = arith.constant 0.353553385 : f32
    %61 = vector.broadcast %cst_33 : f32 to vector<2x8x8xf32>
    %62 = arith.mulf %60, %61 : vector<2x8x8xf32>
    %63 = arith.addf %62, %59 : vector<2x8x8xf32>
    %cst_34 = arith.constant dense<0xFF800000> : vector<2x8xf32>
    %64 = vector.multi_reduction <maximumf>, %63, %cst_34 [2] : vector<2x8x8xf32> to vector<2x8xf32>
    %65 = vector.shape_cast %64 : vector<2x8xf32> to vector<2x8x1xf32>
    %66 = arith.maximumf %51, %65 : vector<2x8x1xf32>
    %67 = arith.subf %51, %66 : vector<2x8x1xf32>
    %68 = math.exp %67 : vector<2x8x1xf32>
    %69 = vector.broadcast %66 : vector<2x8x1xf32> to vector<2x8x8xf32>
    %70 = arith.subf %63, %69 : vector<2x8x8xf32>
    %71 = math.exp %70 : vector<2x8x8xf32>
    %72 = arith.mulf %68, %52 : vector<2x8x1xf32>
    %cst_35 = arith.constant dense<0.000000e+00> : vector<2x8xf32>
    %73 = vector.multi_reduction <add>, %71, %cst_35 [2] : vector<2x8x8xf32> to vector<2x8xf32>
    %74 = vector.shape_cast %73 : vector<2x8xf32> to vector<2x8x1xf32>
    %75 = arith.addf %72, %74 : vector<2x8x1xf32>
    %76 = vector.broadcast %68 : vector<2x8x1xf32> to vector<2x8x8xf32>
    %77 = arith.mulf %76, %53 : vector<2x8x8xf32>
    %78 = arith.truncf %71 : vector<2x8x8xf32> to vector<2x8x8xbf16>
    "tpu.trace_start"() <{level = 10 : i32, message = "bqk,bkd->bqd"}> : () -> ()
    %cst_36 = arith.constant dense<0.000000e+00> : vector<2x8x8xf32>
    %79 = tpu.matmul %78, %50, %cst_36 {dimension_numbers = #tpu.dot_dimension_numbers<[2], [1], [1], [2], [0, 0, 0, 1, 1, 2], [0], [0]>} : vector<2x8x8xbf16>, vector<2x8x8xbf16>, vector<2x8x8xf32> -> vector<2x8x8xf32>
    "tpu.trace_stop"() : () -> ()
    %80 = arith.addf %77, %79 : vector<2x8x8xf32>
    %81 = tpu.reciprocal %75 {approx = true} : vector<2x8x1xf32> -> vector<2x8x1xf32>
    %82 = vector.broadcast %81 : vector<2x8x1xf32> to vector<2x8x8xf32>
    %83 = arith.mulf %80, %82 : vector<2x8x8xf32>
    %84 = arith.truncf %83 : vector<2x8x8xf32> to vector<2x8x8xbf16>
    %85 = vector.shape_cast %84 : vector<2x8x8xbf16> to vector<16x8xbf16>
    %86 = vector.extract_strided_slice %40 {offsets = [0, 0], sizes = [8, 32], strides = [1, 1]} : vector<32x32xbf16> to vector<8x32xbf16>
    %cst_37 = arith.constant dense<0.000000e+00> : vector<16x32xf32>
    %87 = tpu.matmul %85, %86, %cst_37 {dimension_numbers = #tpu.dot_dimension_numbers<[1], [0], [0], [1], [0, 0, 1, 1], [], []>} : vector<16x8xbf16>, vector<8x32xbf16>, vector<16x32xf32> -> vector<16x32xf32>
    %88 = arith.addf %41, %87 : vector<16x32xf32>
    %89 = vector.extract_strided_slice %38 {offsets = [0, 8], sizes = [16, 8], strides = [1, 1]} : vector<16x96xf32> to vector<16x8xf32>
    %90 = vector.shape_cast %89 : vector<16x8xf32> to vector<2x8x8xf32>
    %91 = arith.truncf %90 : vector<2x8x8xf32> to vector<2x8x8xbf16>
    %92 = vector.extract_strided_slice %38 {offsets = [0, 40], sizes = [16, 8], strides = [1, 1]} : vector<16x96xf32> to vector<16x8xf32>
    %93 = vector.shape_cast %92 : vector<16x8xf32> to vector<2x8x8xf32>
    %94 = arith.truncf %93 : vector<2x8x8xf32> to vector<2x8x8xbf16>
    %95 = vector.extract_strided_slice %38 {offsets = [0, 72], sizes = [16, 8], strides = [1, 1]} : vector<16x96xf32> to vector<16x8xf32>
    %96 = vector.shape_cast %95 : vector<16x8xf32> to vector<2x8x8xf32>
    %97 = arith.truncf %96 : vector<2x8x8xf32> to vector<2x8x8xbf16>
    %cst_38 = arith.constant -1.000000e+30 : f32
    %98 = vector.broadcast %cst_38 : f32 to vector<2x8x1xf32>
    %cst_39 = arith.constant 0.000000e+00 : f32
    %99 = vector.broadcast %cst_39 : f32 to vector<2x8x1xf32>
    %cst_40 = arith.constant 0.000000e+00 : f32
    %100 = vector.broadcast %cst_40 : f32 to vector<2x8x8xf32>
    %c0_41 = arith.constant 0 : index
    %c0_42 = arith.constant 0 : index
    %101 = vector.load %arg21[%c0_41, %c0_42] : memref<8x8xf32, #tpu.memory_space<vmem>>, vector<8x8xf32>
    %102 = vector.shape_cast %101 : vector<8x8xf32> to vector<1x8x8xf32>
    %c0_43 = arith.constant 0 : index
    %c0_44 = arith.constant 0 : index
    %c0_45 = arith.constant 0 : index
    %103 = vector.load %arg22[%c0_43, %c0_44, %c0_45] : memref<2x1x8xf32, #tpu.memory_space<vmem>>, vector<2x1x8xf32>
    %104 = vector.broadcast %102 : vector<1x8x8xf32> to vector<2x8x8xf32>
    %105 = vector.broadcast %103 : vector<2x1x8xf32> to vector<2x8x8xf32>
    %106 = arith.addf %104, %105 : vector<2x8x8xf32>
    "tpu.trace_start"() <{level = 10 : i32, message = "bqd,bkd->bqk"}> : () -> ()
    %cst_46 = arith.constant dense<0.000000e+00> : vector<2x8x8xf32>
    %107 = tpu.matmul %91, %94, %cst_46 {dimension_numbers = #tpu.dot_dimension_numbers<[2], [2], [1], [1], [0, 0, 0, 1, 1, 1], [0], [0]>} : vector<2x8x8xbf16>, vector<2x8x8xbf16>, vector<2x8x8xf32> -> vector<2x8x8xf32>
    "tpu.trace_stop"() : () -> ()
    %cst_47 = arith.constant 0.353553385 : f32
    %108 = vector.broadcast %cst_47 : f32 to vector<2x8x8xf32>
    %109 = arith.mulf %107, %108 : vector<2x8x8xf32>
    %110 = arith.addf %109, %106 : vector<2x8x8xf32>
    %cst_48 = arith.constant dense<0xFF800000> : vector<2x8xf32>
    %111 = vector.multi_reduction <maximumf>, %110, %cst_48 [2] : vector<2x8x8xf32> to vector<2x8xf32>
    %112 = vector.shape_cast %111 : vector<2x8xf32> to vector<2x8x1xf32>
    %113 = arith.maximumf %98, %112 : vector<2x8x1xf32>
    %114 = arith.subf %98, %113 : vector<2x8x1xf32>
    %115 = math.exp %114 : vector<2x8x1xf32>
    %116 = vector.broadcast %113 : vector<2x8x1xf32> to vector<2x8x8xf32>
    %117 = arith.subf %110, %116 : vector<2x8x8xf32>
    %118 = math.exp %117 : vector<2x8x8xf32>
    %119 = arith.mulf %115, %99 : vector<2x8x1xf32>
    %cst_49 = arith.constant dense<0.000000e+00> : vector<2x8xf32>
    %120 = vector.multi_reduction <add>, %118, %cst_49 [2] : vector<2x8x8xf32> to vector<2x8xf32>
    %121 = vector.shape_cast %120 : vector<2x8xf32> to vector<2x8x1xf32>
    %122 = arith.addf %119, %121 : vector<2x8x1xf32>
    %123 = vector.broadcast %115 : vector<2x8x1xf32> to vector<2x8x8xf32>
    %124 = arith.mulf %123, %100 : vector<2x8x8xf32>
    %125 = arith.truncf %118 : vector<2x8x8xf32> to vector<2x8x8xbf16>
    "tpu.trace_start"() <{level = 10 : i32, message = "bqk,bkd->bqd"}> : () -> ()
    %cst_50 = arith.constant dense<0.000000e+00> : vector<2x8x8xf32>
    %126 = tpu.matmul %125, %97, %cst_50 {dimension_numbers = #tpu.dot_dimension_numbers<[2], [1], [1], [2], [0, 0, 0, 1, 1, 2], [0], [0]>} : vector<2x8x8xbf16>, vector<2x8x8xbf16>, vector<2x8x8xf32> -> vector<2x8x8xf32>
    "tpu.trace_stop"() : () -> ()
    %127 = arith.addf %124, %126 : vector<2x8x8xf32>
    %128 = tpu.reciprocal %122 {approx = true} : vector<2x8x1xf32> -> vector<2x8x1xf32>
    %129 = vector.broadcast %128 : vector<2x8x1xf32> to vector<2x8x8xf32>
    %130 = arith.mulf %127, %129 : vector<2x8x8xf32>
    %131 = arith.truncf %130 : vector<2x8x8xf32> to vector<2x8x8xbf16>
    %132 = vector.shape_cast %131 : vector<2x8x8xbf16> to vector<16x8xbf16>
    %133 = vector.extract_strided_slice %40 {offsets = [8, 0], sizes = [8, 32], strides = [1, 1]} : vector<32x32xbf16> to vector<8x32xbf16>
    %cst_51 = arith.constant dense<0.000000e+00> : vector<16x32xf32>
    %134 = tpu.matmul %132, %133, %cst_51 {dimension_numbers = #tpu.dot_dimension_numbers<[1], [0], [0], [1], [0, 0, 1, 1], [], []>} : vector<16x8xbf16>, vector<8x32xbf16>, vector<16x32xf32> -> vector<16x32xf32>
    %135 = arith.addf %88, %134 : vector<16x32xf32>
    %136 = vector.extract_strided_slice %38 {offsets = [0, 16], sizes = [16, 8], strides = [1, 1]} : vector<16x96xf32> to vector<16x8xf32>
    %137 = vector.shape_cast %136 : vector<16x8xf32> to vector<2x8x8xf32>
    %138 = arith.truncf %137 : vector<2x8x8xf32> to vector<2x8x8xbf16>
    %139 = vector.extract_strided_slice %38 {offsets = [0, 48], sizes = [16, 8], strides = [1, 1]} : vector<16x96xf32> to vector<16x8xf32>
    %140 = vector.shape_cast %139 : vector<16x8xf32> to vector<2x8x8xf32>
    %141 = arith.truncf %140 : vector<2x8x8xf32> to vector<2x8x8xbf16>
    %142 = vector.extract_strided_slice %38 {offsets = [0, 80], sizes = [16, 8], strides = [1, 1]} : vector<16x96xf32> to vector<16x8xf32>
    %143 = vector.shape_cast %142 : vector<16x8xf32> to vector<2x8x8xf32>
    %144 = arith.truncf %143 : vector<2x8x8xf32> to vector<2x8x8xbf16>
    %cst_52 = arith.constant -1.000000e+30 : f32
    %145 = vector.broadcast %cst_52 : f32 to vector<2x8x1xf32>
    %cst_53 = arith.constant 0.000000e+00 : f32
    %146 = vector.broadcast %cst_53 : f32 to vector<2x8x1xf32>
    %cst_54 = arith.constant 0.000000e+00 : f32
    %147 = vector.broadcast %cst_54 : f32 to vector<2x8x8xf32>
    %c0_55 = arith.constant 0 : index
    %c0_56 = arith.constant 0 : index
    %148 = vector.load %arg21[%c0_55, %c0_56] : memref<8x8xf32, #tpu.memory_space<vmem>>, vector<8x8xf32>
    %149 = vector.shape_cast %148 : vector<8x8xf32> to vector<1x8x8xf32>
    %c0_57 = arith.constant 0 : index
    %c0_58 = arith.constant 0 : index
    %c0_59 = arith.constant 0 : index
    %150 = vector.load %arg22[%c0_57, %c0_58, %c0_59] : memref<2x1x8xf32, #tpu.memory_space<vmem>>, vector<2x1x8xf32>
    %151 = vector.broadcast %149 : vector<1x8x8xf32> to vector<2x8x8xf32>
    %152 = vector.broadcast %150 : vector<2x1x8xf32> to vector<2x8x8xf32>
    %153 = arith.addf %151, %152 : vector<2x8x8xf32>
    "tpu.trace_start"() <{level = 10 : i32, message = "bqd,bkd->bqk"}> : () -> ()
    %cst_60 = arith.constant dense<0.000000e+00> : vector<2x8x8xf32>
    %154 = tpu.matmul %138, %141, %cst_60 {dimension_numbers = #tpu.dot_dimension_numbers<[2], [2], [1], [1], [0, 0, 0, 1, 1, 1], [0], [0]>} : vector<2x8x8xbf16>, vector<2x8x8xbf16>, vector<2x8x8xf32> -> vector<2x8x8xf32>
    "tpu.trace_stop"() : () -> ()
    %cst_61 = arith.constant 0.353553385 : f32
    %155 = vector.broadcast %cst_61 : f32 to vector<2x8x8xf32>
    %156 = arith.mulf %154, %155 : vector<2x8x8xf32>
    %157 = arith.addf %156, %153 : vector<2x8x8xf32>
    %cst_62 = arith.constant dense<0xFF800000> : vector<2x8xf32>
    %158 = vector.multi_reduction <maximumf>, %157, %cst_62 [2] : vector<2x8x8xf32> to vector<2x8xf32>
    %159 = vector.shape_cast %158 : vector<2x8xf32> to vector<2x8x1xf32>
    %160 = arith.maximumf %145, %159 : vector<2x8x1xf32>
    %161 = arith.subf %145, %160 : vector<2x8x1xf32>
    %162 = math.exp %161 : vector<2x8x1xf32>
    %163 = vector.broadcast %160 : vector<2x8x1xf32> to vector<2x8x8xf32>
    %164 = arith.subf %157, %163 : vector<2x8x8xf32>
    %165 = math.exp %164 : vector<2x8x8xf32>
    %166 = arith.mulf %162, %146 : vector<2x8x1xf32>
    %cst_63 = arith.constant dense<0.000000e+00> : vector<2x8xf32>
    %167 = vector.multi_reduction <add>, %165, %cst_63 [2] : vector<2x8x8xf32> to vector<2x8xf32>
    %168 = vector.shape_cast %167 : vector<2x8xf32> to vector<2x8x1xf32>
    %169 = arith.addf %166, %168 : vector<2x8x1xf32>
    %170 = vector.broadcast %162 : vector<2x8x1xf32> to vector<2x8x8xf32>
    %171 = arith.mulf %170, %147 : vector<2x8x8xf32>
    %172 = arith.truncf %165 : vector<2x8x8xf32> to vector<2x8x8xbf16>
    "tpu.trace_start"() <{level = 10 : i32, message = "bqk,bkd->bqd"}> : () -> ()
    %cst_64 = arith.constant dense<0.000000e+00> : vector<2x8x8xf32>
    %173 = tpu.matmul %172, %144, %cst_64 {dimension_numbers = #tpu.dot_dimension_numbers<[2], [1], [1], [2], [0, 0, 0, 1, 1, 2], [0], [0]>} : vector<2x8x8xbf16>, vector<2x8x8xbf16>, vector<2x8x8xf32> -> vector<2x8x8xf32>
    "tpu.trace_stop"() : () -> ()
    %174 = arith.addf %171, %173 : vector<2x8x8xf32>
    %175 = tpu.reciprocal %169 {approx = true} : vector<2x8x1xf32> -> vector<2x8x1xf32>
    %176 = vector.broadcast %175 : vector<2x8x1xf32> to vector<2x8x8xf32>
    %177 = arith.mulf %174, %176 : vector<2x8x8xf32>
    %178 = arith.truncf %177 : vector<2x8x8xf32> to vector<2x8x8xbf16>
    %179 = vector.shape_cast %178 : vector<2x8x8xbf16> to vector<16x8xbf16>
    %180 = vector.extract_strided_slice %40 {offsets = [16, 0], sizes = [8, 32], strides = [1, 1]} : vector<32x32xbf16> to vector<8x32xbf16>
    %cst_65 = arith.constant dense<0.000000e+00> : vector<16x32xf32>
    %181 = tpu.matmul %179, %180, %cst_65 {dimension_numbers = #tpu.dot_dimension_numbers<[1], [0], [0], [1], [0, 0, 1, 1], [], []>} : vector<16x8xbf16>, vector<8x32xbf16>, vector<16x32xf32> -> vector<16x32xf32>
    %182 = arith.addf %135, %181 : vector<16x32xf32>
    %183 = vector.extract_strided_slice %38 {offsets = [0, 24], sizes = [16, 8], strides = [1, 1]} : vector<16x96xf32> to vector<16x8xf32>
    %184 = vector.shape_cast %183 : vector<16x8xf32> to vector<2x8x8xf32>
    %185 = arith.truncf %184 : vector<2x8x8xf32> to vector<2x8x8xbf16>
    %186 = vector.extract_strided_slice %38 {offsets = [0, 56], sizes = [16, 8], strides = [1, 1]} : vector<16x96xf32> to vector<16x8xf32>
    %187 = vector.shape_cast %186 : vector<16x8xf32> to vector<2x8x8xf32>
    %188 = arith.truncf %187 : vector<2x8x8xf32> to vector<2x8x8xbf16>
    %189 = vector.extract_strided_slice %38 {offsets = [0, 88], sizes = [16, 8], strides = [1, 1]} : vector<16x96xf32> to vector<16x8xf32>
    %190 = vector.shape_cast %189 : vector<16x8xf32> to vector<2x8x8xf32>
    %191 = arith.truncf %190 : vector<2x8x8xf32> to vector<2x8x8xbf16>
    %cst_66 = arith.constant -1.000000e+30 : f32
    %192 = vector.broadcast %cst_66 : f32 to vector<2x8x1xf32>
    %cst_67 = arith.constant 0.000000e+00 : f32
    %193 = vector.broadcast %cst_67 : f32 to vector<2x8x1xf32>
    %cst_68 = arith.constant 0.000000e+00 : f32
    %194 = vector.broadcast %cst_68 : f32 to vector<2x8x8xf32>
    %c0_69 = arith.constant 0 : index
    %c0_70 = arith.constant 0 : index
    %195 = vector.load %arg21[%c0_69, %c0_70] : memref<8x8xf32, #tpu.memory_space<vmem>>, vector<8x8xf32>
    %196 = vector.shape_cast %195 : vector<8x8xf32> to vector<1x8x8xf32>
    %c0_71 = arith.constant 0 : index
    %c0_72 = arith.constant 0 : index
    %c0_73 = arith.constant 0 : index
    %197 = vector.load %arg22[%c0_71, %c0_72, %c0_73] : memref<2x1x8xf32, #tpu.memory_space<vmem>>, vector<2x1x8xf32>
    %198 = vector.broadcast %196 : vector<1x8x8xf32> to vector<2x8x8xf32>
    %199 = vector.broadcast %197 : vector<2x1x8xf32> to vector<2x8x8xf32>
    %200 = arith.addf %198, %199 : vector<2x8x8xf32>
    "tpu.trace_start"() <{level = 10 : i32, message = "bqd,bkd->bqk"}> : () -> ()
    %cst_74 = arith.constant dense<0.000000e+00> : vector<2x8x8xf32>
    %201 = tpu.matmul %185, %188, %cst_74 {dimension_numbers = #tpu.dot_dimension_numbers<[2], [2], [1], [1], [0, 0, 0, 1, 1, 1], [0], [0]>} : vector<2x8x8xbf16>, vector<2x8x8xbf16>, vector<2x8x8xf32> -> vector<2x8x8xf32>
    "tpu.trace_stop"() : () -> ()
    %cst_75 = arith.constant 0.353553385 : f32
    %202 = vector.broadcast %cst_75 : f32 to vector<2x8x8xf32>
    %203 = arith.mulf %201, %202 : vector<2x8x8xf32>
    %204 = arith.addf %203, %200 : vector<2x8x8xf32>
    %cst_76 = arith.constant dense<0xFF800000> : vector<2x8xf32>
    %205 = vector.multi_reduction <maximumf>, %204, %cst_76 [2] : vector<2x8x8xf32> to vector<2x8xf32>
    %206 = vector.shape_cast %205 : vector<2x8xf32> to vector<2x8x1xf32>
    %207 = arith.maximumf %192, %206 : vector<2x8x1xf32>
    %208 = arith.subf %192, %207 : vector<2x8x1xf32>
    %209 = math.exp %208 : vector<2x8x1xf32>
    %210 = vector.broadcast %207 : vector<2x8x1xf32> to vector<2x8x8xf32>
    %211 = arith.subf %204, %210 : vector<2x8x8xf32>
    %212 = math.exp %211 : vector<2x8x8xf32>
    %213 = arith.mulf %209, %193 : vector<2x8x1xf32>
    %cst_77 = arith.constant dense<0.000000e+00> : vector<2x8xf32>
    %214 = vector.multi_reduction <add>, %212, %cst_77 [2] : vector<2x8x8xf32> to vector<2x8xf32>
    %215 = vector.shape_cast %214 : vector<2x8xf32> to vector<2x8x1xf32>
    %216 = arith.addf %213, %215 : vector<2x8x1xf32>
    %217 = vector.broadcast %209 : vector<2x8x1xf32> to vector<2x8x8xf32>
    %218 = arith.mulf %217, %194 : vector<2x8x8xf32>
    %219 = arith.truncf %212 : vector<2x8x8xf32> to vector<2x8x8xbf16>
    "tpu.trace_start"() <{level = 10 : i32, message = "bqk,bkd->bqd"}> : () -> ()
    %cst_78 = arith.constant dense<0.000000e+00> : vector<2x8x8xf32>
    %220 = tpu.matmul %219, %191, %cst_78 {dimension_numbers = #tpu.dot_dimension_numbers<[2], [1], [1], [2], [0, 0, 0, 1, 1, 2], [0], [0]>} : vector<2x8x8xbf16>, vector<2x8x8xbf16>, vector<2x8x8xf32> -> vector<2x8x8xf32>
    "tpu.trace_stop"() : () -> ()
    %221 = arith.addf %218, %220 : vector<2x8x8xf32>
    %222 = tpu.reciprocal %216 {approx = true} : vector<2x8x1xf32> -> vector<2x8x1xf32>
    %223 = vector.broadcast %222 : vector<2x8x1xf32> to vector<2x8x8xf32>
    %224 = arith.mulf %221, %223 : vector<2x8x8xf32>
    %225 = arith.truncf %224 : vector<2x8x8xf32> to vector<2x8x8xbf16>
    %226 = vector.shape_cast %225 : vector<2x8x8xbf16> to vector<16x8xbf16>
    %227 = vector.extract_strided_slice %40 {offsets = [24, 0], sizes = [8, 32], strides = [1, 1]} : vector<32x32xbf16> to vector<8x32xbf16>
    %cst_79 = arith.constant dense<0.000000e+00> : vector<16x32xf32>
    %228 = tpu.matmul %226, %227, %cst_79 {dimension_numbers = #tpu.dot_dimension_numbers<[1], [0], [0], [1], [0, 0, 1, 1], [], []>} : vector<16x8xbf16>, vector<8x32xbf16>, vector<16x32xf32> -> vector<16x32xf32>
    %229 = arith.addf %182, %228 : vector<16x32xf32>
    %230 = arith.addf %4, %229 : vector<16x32xf32>
    %c0_80 = arith.constant 0 : index
    %c0_81 = arith.constant 0 : index
    %c0_82 = arith.constant 0 : index
    %231 = vector.load %arg9[%c0_80, %c0_81, %c0_82] : memref<1x1x32xf32, #tpu.memory_space<vmem>>, vector<1x1x32xf32>
    %232 = vector.shape_cast %231 : vector<1x1x32xf32> to vector<1x32xf32>
    %233 = vector.broadcast %232 : vector<1x32xf32> to vector<16x32xf32>
    %234 = arith.addf %230, %233 : vector<16x32xf32>
    %c0_83 = arith.constant 0 : index
    %c0_84 = arith.constant 0 : index
    %c0_85 = arith.constant 0 : index
    %235 = vector.load %arg10[%c0_83, %c0_84, %c0_85] : memref<1x1x32xf32, #tpu.memory_space<vmem>>, vector<1x1x32xf32>
    %236 = vector.shape_cast %235 : vector<1x1x32xf32> to vector<1x32xf32>
    %c0_86 = arith.constant 0 : index
    %c0_87 = arith.constant 0 : index
    %c0_88 = arith.constant 0 : index
    %237 = vector.load %arg11[%c0_86, %c0_87, %c0_88] : memref<1x1x32xf32, #tpu.memory_space<vmem>>, vector<1x1x32xf32>
    %238 = vector.shape_cast %237 : vector<1x1x32xf32> to vector<1x32xf32>
    %cst_89 = arith.constant dense<0.000000e+00> : vector<16xf32>
    %239 = vector.multi_reduction <add>, %234, %cst_89 [1] : vector<16x32xf32> to vector<16xf32>
    %240 = vector.shape_cast %239 : vector<16xf32> to vector<16x1xf32>
    %cst_90 = arith.constant 3.200000e+01 : f32
    %241 = vector.broadcast %cst_90 : f32 to vector<16x1xf32>
    %242 = arith.divf %240, %241 : vector<16x1xf32>
    %243 = vector.broadcast %242 : vector<16x1xf32> to vector<16x32xf32>
    %244 = arith.subf %234, %243 : vector<16x32xf32>
    %245 = arith.mulf %244, %244 : vector<16x32xf32>
    %cst_91 = arith.constant dense<0.000000e+00> : vector<16xf32>
    %246 = vector.multi_reduction <add>, %245, %cst_91 [1] : vector<16x32xf32> to vector<16xf32>
    %247 = vector.shape_cast %246 : vector<16xf32> to vector<16x1xf32>
    %cst_92 = arith.constant 3.200000e+01 : f32
    %248 = vector.broadcast %cst_92 : f32 to vector<16x1xf32>
    %249 = arith.divf %247, %248 : vector<16x1xf32>
    %250 = vector.broadcast %242 : vector<16x1xf32> to vector<16x32xf32>
    %251 = arith.subf %234, %250 : vector<16x32xf32>
    %cst_93 = arith.constant 9.99999974E-6 : f32
    %252 = vector.broadcast %cst_93 : f32 to vector<16x1xf32>
    %253 = arith.addf %249, %252 : vector<16x1xf32>
    %254 = math.rsqrt %253 : vector<16x1xf32>
    %255 = vector.broadcast %254 : vector<16x1xf32> to vector<16x32xf32>
    %256 = arith.mulf %251, %255 : vector<16x32xf32>
    %257 = vector.broadcast %236 : vector<1x32xf32> to vector<16x32xf32>
    %258 = arith.mulf %256, %257 : vector<16x32xf32>
    %259 = vector.broadcast %238 : vector<1x32xf32> to vector<16x32xf32>
    %260 = arith.addf %258, %259 : vector<16x32xf32>
    %261 = arith.truncf %260 : vector<16x32xf32> to vector<16x32xbf16>
    %c0_94 = arith.constant 0 : index
    %c0_95 = arith.constant 0 : index
    %c0_96 = arith.constant 0 : index
    %262 = vector.load %arg12[%c0_94, %c0_95, %c0_96] : memref<1x32x128xbf16, #tpu.memory_space<vmem>>, vector<1x32x128xbf16>
    %263 = vector.shape_cast %262 : vector<1x32x128xbf16> to vector<32x128xbf16>
    %cst_97 = arith.constant dense<0.000000e+00> : vector<16x128xf32>
    %264 = tpu.matmul %261, %263, %cst_97 {dimension_numbers = #tpu.dot_dimension_numbers<[1], [0], [0], [1], [0, 0, 1, 1], [], []>} : vector<16x32xbf16>, vector<32x128xbf16>, vector<16x128xf32> -> vector<16x128xf32>
    %c0_98 = arith.constant 0 : index
    %c0_99 = arith.constant 0 : index
    %c0_100 = arith.constant 0 : index
    %265 = vector.load %arg13[%c0_98, %c0_99, %c0_100] : memref<1x1x128xf32, #tpu.memory_space<vmem>>, vector<1x1x128xf32>
    %266 = vector.shape_cast %265 : vector<1x1x128xf32> to vector<1x128xf32>
    %267 = vector.broadcast %266 : vector<1x128xf32> to vector<16x128xf32>
    %268 = arith.addf %264, %267 : vector<16x128xf32>
    %269 = arith.mulf %268, %268 : vector<16x128xf32>
    %270 = arith.mulf %268, %269 : vector<16x128xf32>
    %cst_101 = arith.constant 4.471500e-02 : f32
    %271 = vector.broadcast %cst_101 : f32 to vector<16x128xf32>
    %272 = arith.mulf %271, %270 : vector<16x128xf32>
    %273 = arith.addf %268, %272 : vector<16x128xf32>
    %cst_102 = arith.constant 0.797884583 : f32
    %274 = vector.broadcast %cst_102 : f32 to vector<16x128xf32>
    %275 = arith.mulf %274, %273 : vector<16x128xf32>
    %276 = math.tanh %275 : vector<16x128xf32>
    %cst_103 = arith.constant 1.000000e+00 : f32
    %277 = vector.broadcast %cst_103 : f32 to vector<16x128xf32>
    %278 = arith.addf %277, %276 : vector<16x128xf32>
    %cst_104 = arith.constant 5.000000e-01 : f32
    %279 = vector.broadcast %cst_104 : f32 to vector<16x128xf32>
    %280 = arith.mulf %279, %278 : vector<16x128xf32>
    %281 = arith.mulf %268, %280 : vector<16x128xf32>
    %282 = arith.truncf %281 : vector<16x128xf32> to vector<16x128xbf16>
    %c0_105 = arith.constant 0 : index
    %c0_106 = arith.constant 0 : index
    %c0_107 = arith.constant 0 : index
    %283 = vector.load %arg14[%c0_105, %c0_106, %c0_107] : memref<1x128x32xbf16, #tpu.memory_space<vmem>>, vector<1x128x32xbf16>
    %284 = vector.shape_cast %283 : vector<1x128x32xbf16> to vector<128x32xbf16>
    %cst_108 = arith.constant dense<0.000000e+00> : vector<16x32xf32>
    %285 = tpu.matmul %282, %284, %cst_108 {dimension_numbers = #tpu.dot_dimension_numbers<[1], [0], [0], [1], [0, 0, 1, 1], [], []>} : vector<16x128xbf16>, vector<128x32xbf16>, vector<16x32xf32> -> vector<16x32xf32>
    %c0_109 = arith.constant 0 : index
    %c0_110 = arith.constant 0 : index
    %c0_111 = arith.constant 0 : index
    %286 = vector.load %arg15[%c0_109, %c0_110, %c0_111] : memref<1x1x32xf32, #tpu.memory_space<vmem>>, vector<1x1x32xf32>
    %287 = vector.shape_cast %286 : vector<1x1x32xf32> to vector<1x32xf32>
    %288 = vector.broadcast %287 : vector<1x32xf32> to vector<16x32xf32>
    %289 = arith.addf %285, %288 : vector<16x32xf32>
    %290 = arith.addf %234, %289 : vector<16x32xf32>
    %291 = vector.shape_cast %290 : vector<16x32xf32> to vector<2x8x32xf32>
    %c0_112 = arith.constant 0 : index
    %c0_113 = arith.constant 0 : index
    %c0_114 = arith.constant 0 : index
    %292 = vector.load %arg20[%c0_112, %c0_113, %c0_114] : memref<2x8x32xf32, #tpu.memory_space<vmem>>, vector<2x8x32xf32>
    tpu.vector_store %arg20[%c0_112, %c0_113, %c0_114], %291 {strides = array<i32>} : memref<2x8x32xf32, #tpu.memory_space<vmem>>, vector<2x8x32xf32>,
    %c1_i32 = arith.constant 1 : i32
    %293 = arith.cmpi eq, %arg1, %c1_i32 : i32
    %294 = arith.extui %293 : i1 to i32
    %c0_i32_115 = arith.constant 0 : i32
    %295 = arith.cmpi ne, %294, %c0_i32_115 : i32
    scf.if %295 {
      %c0_116 = arith.constant 0 : index
      %c0_117 = arith.constant 0 : index
      %296 = vector.load %arg16[%c0_116, %c0_117] : memref<1x32xf32, #tpu.memory_space<vmem>>, vector<1x32xf32>
      %c0_118 = arith.constant 0 : index
      %c0_119 = arith.constant 0 : index
      %297 = vector.load %arg17[%c0_118, %c0_119] : memref<1x32xf32, #tpu.memory_space<vmem>>, vector<1x32xf32>
      %cst_120 = arith.constant dense<0.000000e+00> : vector<16xf32>
      %298 = vector.multi_reduction <add>, %290, %cst_120 [1] : vector<16x32xf32> to vector<16xf32>
      %299 = vector.shape_cast %298 : vector<16xf32> to vector<16x1xf32>
      %cst_121 = arith.constant 3.200000e+01 : f32
      %300 = vector.broadcast %cst_121 : f32 to vector<16x1xf32>
      %301 = arith.divf %299, %300 : vector<16x1xf32>
      %302 = vector.broadcast %301 : vector<16x1xf32> to vector<16x32xf32>
      %303 = arith.subf %290, %302 : vector<16x32xf32>
      %304 = arith.mulf %303, %303 : vector<16x32xf32>
      %cst_122 = arith.constant dense<0.000000e+00> : vector<16xf32>
      %305 = vector.multi_reduction <add>, %304, %cst_122 [1] : vector<16x32xf32> to vector<16xf32>
      %306 = vector.shape_cast %305 : vector<16xf32> to vector<16x1xf32>
      %cst_123 = arith.constant 3.200000e+01 : f32
      %307 = vector.broadcast %cst_123 : f32 to vector<16x1xf32>
      %308 = arith.divf %306, %307 : vector<16x1xf32>
      %309 = vector.broadcast %301 : vector<16x1xf32> to vector<16x32xf32>
      %310 = arith.subf %290, %309 : vector<16x32xf32>
      %cst_124 = arith.constant 9.99999974E-6 : f32
      %311 = vector.broadcast %cst_124 : f32 to vector<16x1xf32>
      %312 = arith.addf %308, %311 : vector<16x1xf32>
      %313 = math.rsqrt %312 : vector<16x1xf32>
      %314 = vector.broadcast %313 : vector<16x1xf32> to vector<16x32xf32>
      %315 = arith.mulf %310, %314 : vector<16x32xf32>
      %316 = vector.broadcast %296 : vector<1x32xf32> to vector<16x32xf32>
      %317 = arith.mulf %315, %316 : vector<16x32xf32>
      %318 = vector.broadcast %297 : vector<1x32xf32> to vector<16x32xf32>
      %319 = arith.addf %317, %318 : vector<16x32xf32>
      %c0_125 = arith.constant 0 : index
      %c0_126 = arith.constant 0 : index
      %320 = vector.load %arg18[%c0_125, %c0_126] : memref<1x32xf32, #tpu.memory_space<vmem>>, vector<1x32xf32>
      %321 = vector.broadcast %320 : vector<1x32xf32> to vector<16x32xf32>
      %322 = arith.mulf %319, %321 : vector<16x32xf32>
      %cst_127 = arith.constant dense<0.000000e+00> : vector<16xf32>
      %323 = vector.multi_reduction <add>, %322, %cst_127 [1] : vector<16x32xf32> to vector<16xf32>
      %324 = vector.shape_cast %323 : vector<16xf32> to vector<16x1xf32>
      %325 = vector.shape_cast %324 : vector<16x1xf32> to vector<2x8x1xf32>
      %cst_128 = arith.constant dense<0.000000e+00> : vector<2x1xf32>
      %326 = vector.multi_reduction <add>, %325, %cst_128 [1] : vector<2x8x1xf32> to vector<2x1xf32>
      %327 = vector.shape_cast %326 : vector<2x1xf32> to vector<2x1x1xf32>
      %cst_129 = arith.constant 8.000000e+00 : f32
      %328 = vector.broadcast %cst_129 : f32 to vector<2x1x1xf32>
      %329 = arith.divf %327, %328 : vector<2x1x1xf32>
      %c0_130 = arith.constant 0 : index
      %c0_131 = arith.constant 0 : index
      %c0_132 = arith.constant 0 : index
      %330 = vector.load %arg19[%c0_130, %c0_131, %c0_132] : memref<2x1x1xf32, #tpu.memory_space<vmem>>, vector<2x1x1xf32>
      tpu.vector_store %arg19[%c0_130, %c0_131, %c0_132], %329 {strides = array<i32>} : memref<2x1x1xf32, #tpu.memory_space<vmem>>, vector<2x1x1xf32>,
    } else {
    }
    return
  }
  func.func @transform_0(%arg0: i32, %arg1: i32) -> (i32, i32, i32) {
    %c0_i32 = arith.constant 0 : i32
    %c0_i32_0 = arith.constant 0 : i32
    %c0_i32_1 = arith.constant 0 : i32
    return %arg0, %c0_i32, %c0_i32_0 : i32, i32, i32
  }
  func.func @transform_1(%arg0: i32, %arg1: i32) -> (i32, i32, i32) {
    %c0_i32 = arith.constant 0 : i32
    %c0_i32_0 = arith.constant 0 : i32
    %c0_i32_1 = arith.constant 0 : i32
    return %arg0, %c0_i32, %c0_i32_0 : i32, i32, i32
  }
  func.func @transform_2(%arg0: i32, %arg1: i32) -> (i32, i32, i32) {
    %c0_i32 = arith.constant 0 : i32
    %c0_i32_0 = arith.constant 0 : i32
    %c0_i32_1 = arith.constant 0 : i32
    return %arg1, %c0_i32, %c0_i32_0 : i32, i32, i32
  }
  func.func @transform_3(%arg0: i32, %arg1: i32) -> (i32, i32, i32) {
    %c0_i32 = arith.constant 0 : i32
    %c0_i32_0 = arith.constant 0 : i32
    %c0_i32_1 = arith.constant 0 : i32
    return %arg1, %c0_i32, %c0_i32_0 : i32, i32, i32
  }
  func.func @transform_4(%arg0: i32, %arg1: i32) -> (i32, i32, i32) {
    %c0_i32 = arith.constant 0 : i32
    %c0_i32_0 = arith.constant 0 : i32
    %c0_i32_1 = arith.constant 0 : i32
    return %arg1, %c0_i32, %c0_i32_0 : i32, i32, i32
  }
  func.func @transform_5(%arg0: i32, %arg1: i32) -> (i32, i32, i32) {
    %c0_i32 = arith.constant 0 : i32
    %c0_i32_0 = arith.constant 0 : i32
    %c0_i32_1 = arith.constant 0 : i32
    return %arg1, %c0_i32, %c0_i32_0 : i32, i32, i32
  }
  func.func @transform_6(%arg0: i32, %arg1: i32) -> (i32, i32, i32) {
    %c0_i32 = arith.constant 0 : i32
    %c0_i32_0 = arith.constant 0 : i32
    %c0_i32_1 = arith.constant 0 : i32
    return %arg1, %c0_i32, %c0_i32_0 : i32, i32, i32
  }
  func.func @transform_7(%arg0: i32, %arg1: i32) -> (i32, i32, i32) {
    %c0_i32 = arith.constant 0 : i32
    %c0_i32_0 = arith.constant 0 : i32
    %c0_i32_1 = arith.constant 0 : i32
    return %arg1, %c0_i32, %c0_i32_0 : i32, i32, i32
  }
  func.func @transform_8(%arg0: i32, %arg1: i32) -> (i32, i32, i32) {
    %c0_i32 = arith.constant 0 : i32
    %c0_i32_0 = arith.constant 0 : i32
    %c0_i32_1 = arith.constant 0 : i32
    return %arg1, %c0_i32, %c0_i32_0 : i32, i32, i32
  }
  func.func @transform_9(%arg0: i32, %arg1: i32) -> (i32, i32, i32) {
    %c0_i32 = arith.constant 0 : i32
    %c0_i32_0 = arith.constant 0 : i32
    %c0_i32_1 = arith.constant 0 : i32
    return %arg1, %c0_i32, %c0_i32_0 : i32, i32, i32
  }
  func.func @transform_10(%arg0: i32, %arg1: i32) -> (i32, i32, i32) {
    %c0_i32 = arith.constant 0 : i32
    %c0_i32_0 = arith.constant 0 : i32
    %c0_i32_1 = arith.constant 0 : i32
    return %arg1, %c0_i32, %c0_i32_0 : i32, i32, i32
  }
  func.func @transform_11(%arg0: i32, %arg1: i32) -> (i32, i32, i32) {
    %c0_i32 = arith.constant 0 : i32
    %c0_i32_0 = arith.constant 0 : i32
    %c0_i32_1 = arith.constant 0 : i32
    return %arg1, %c0_i32, %c0_i32_0 : i32, i32, i32
  }
  func.func @transform_12(%arg0: i32, %arg1: i32) -> (i32, i32, i32) {
    %c0_i32 = arith.constant 0 : i32
    %c0_i32_0 = arith.constant 0 : i32
    %c0_i32_1 = arith.constant 0 : i32
    return %arg1, %c0_i32, %c0_i32_0 : i32, i32, i32
  }
  func.func @transform_13(%arg0: i32, %arg1: i32) -> (i32, i32, i32) {
    %c0_i32 = arith.constant 0 : i32
    %c0_i32_0 = arith.constant 0 : i32
    %c0_i32_1 = arith.constant 0 : i32
    return %arg1, %c0_i32, %c0_i32_0 : i32, i32, i32
  }
  func.func @transform_14(%arg0: i32, %arg1: i32) -> (i32, i32) {
    %c0_i32 = arith.constant 0 : i32
    %c0_i32_0 = arith.constant 0 : i32
    %c0_i32_1 = arith.constant 0 : i32
    return %c0_i32, %c0_i32_0 : i32, i32
  }
  func.func @transform_15(%arg0: i32, %arg1: i32) -> (i32, i32) {
    %c0_i32 = arith.constant 0 : i32
    %c0_i32_0 = arith.constant 0 : i32
    %c0_i32_1 = arith.constant 0 : i32
    return %c0_i32, %c0_i32_0 : i32, i32
  }
  func.func @transform_16(%arg0: i32, %arg1: i32) -> (i32, i32) {
    %c0_i32 = arith.constant 0 : i32
    %c0_i32_0 = arith.constant 0 : i32
    %c0_i32_1 = arith.constant 0 : i32
    return %c0_i32, %c0_i32_0 : i32, i32
  }
  func.func @transform_17(%arg0: i32, %arg1: i32) -> (i32, i32, i32) {
    %c0_i32 = arith.constant 0 : i32
    %c0_i32_0 = arith.constant 0 : i32
    %c0_i32_1 = arith.constant 0 : i32
    return %arg0, %c0_i32, %c0_i32_0 : i32, i32, i32
  }
}

</mosaic_0001>

<bundles_post_ra>
// kernel: tpu_custom_call.1
= control target key start
LH: loop header
LB: loop body
LE: loop exit
PB: predicated region body
PF: predicated region fallthrough
CT: control target
= control target key end

     0   :  { %s3240_s24 = smov 0   ;;  %s3242_s25 = smov 0   ;;  %s3645_s0 = inlined_call_operand.vmem [shape: bf16[2,8,32], index: 0, kind: input, shape index: {}]   ;;  %s3646_s1 = inlined_call_operand.vmem [shape: f32[2,1,8], index: 1, kind: input, shape index: {}]   ;;  %s3647_s2 = inlined_call_operand.vmem [shape: f32[2,1,32], index: 2, kind: input, shape index: {}]   ;;  %s3648_s3 = inlined_call_operand.vmem [shape: f32[2,1,32], index: 3, kind: input, shape index: {}]   ;;  %s3649_s4 = inlined_call_operand.vmem [shape: bf16[2,32,96], index: 4, kind: input, shape index: {}]   ;;  %s3650_s5 = inlined_call_operand.vmem [shape: f32[2,1,96], index: 5, kind: input, shape index: {}]   ;;  %s3651_s6 = inlined_call_operand.vmem [shape: bf16[2,32,32], index: 6, kind: input, shape index: {}]   ;;  %s3652_s7 = inlined_call_operand.vmem [shape: f32[2,1,32], index: 7, kind: input, shape index: {}]   ;;  %s3653_s8 = inlined_call_operand.vmem [shape: f32[2,1,32], index: 8, kind: input, shape index: {}]   ;;  %s3654_s9 = inlined_call_operand.vmem [shape: f32[2,1,32], index: 9, kind: input, shape index: {}]   ;;  %s3655_s10 = inlined_call_operand.vmem [shape: bf16[2,32,128], index: 10, kind: input, shape index: {}]   ;;  %s3656_s11 = inlined_call_operand.vmem [shape: f32[2,1,128], index: 11, kind: input, shape index: {}]   ;;  %s3657_s12 = inlined_call_operand.vmem [shape: bf16[2,128,32], index: 12, kind: input, shape index: {}]   ;;  %s3658_s13 = inlined_call_operand.vmem [shape: f32[2,1,32], index: 13, kind: input, shape index: {}]   ;;  %s3659_s14 = inlined_call_operand.vmem [shape: f32[1,32], index: 14, kind: input, shape index: {}]   ;;  %s3660_s15 = inlined_call_operand.vmem [shape: f32[1,32], index: 15, kind: input, shape index: {}]   ;;  %s3661_s16 = inlined_call_operand.vmem [shape: f32[1,32], index: 16, kind: input, shape index: {}]   ;;  %s3662_s17 = inlined_call_operand.vmem [shape: f32[2,1,1], index: 17, kind: output, shape index: {}]  }
   0x1   :  { %3667 = sst [smem:[#allocation8_spill]] %s3645_s0  ;;  %s3244_s26 = smov 0  }
   0x2   :  { %3668 = sst [smem:[#allocation9_spill]] %s3646_s1 }
   0x3   :  { %3669 = sst [smem:[#allocation10_spill]] %s3649_s4 }
   0x4   :  { %3670 = sst [smem:[#allocation11_spill]] %s3651_s6 }
   0x5   :  { %3671 = sst [smem:[#allocation12_spill]] %s3659_s14 }
   0x6   :  { %3672 = sst [smem:[#allocation13_spill]] %s3660_s15 }
   0x7   :  { %3673 = sst [smem:[#allocation14_spill]] %s3661_s16 }
   0x8   :  { %3674 = sst [smem:[#allocation15_spill]] %s3662_s17 }
   0x9 LB: > { %3675 = sst [smem:[#allocation5_spill]] %s3130_s25  ;;  %s36_s27 = sadd.s32 1, %s3130_s25  ;;  %s3134_s26 = sphi %s3244_s26, %s27_s26   ;;  %s3130_s25 = sphi %s3242_s25, %s3693_s25   ;;  %s3126_s24 = sphi %s3240_s24, %s3692_s24  }
   0xa   : > { %3676 = sst [smem:[#allocation6_spill]] %s3134_s26  ;;  %p2699_p0 = scmp.ge.s32.totalorder %s3134_s26, 1 }
   0xb   : > { %p37_p1 = scmp.ge.s32.totalorder %s36_s27, 2  ;;  %p614_p2 = scmp.lt.s32.totalorder %s3134_s26, 3 }
   0xd   : > { %s3695_s27 = smov (%p37_p1, %s36_s27), 0  ;;  %p615_p3 = pnand %p2699_p0, %p614_p2 }
   0xe   : > { %3677 = sst [smem:[#allocation7_spill]] %s3695_s27  ;;  %p724_p4 = scmp.lt.s32.totalorder (!%p615_p3), %s3126_s24, 1 }
   0xf   : > { %618 = sbr.rel (%p615_p3) target bundleno = 4152 (0x1038), region = 88  ;;  %s3678_s4 = sld [smem:[#allocation10_spill]] (!%p615_p3) }
  0x10   : > { %s3679_s6 = sld [smem:[#allocation11_spill]] (!%p615_p3)  ;;  %p2708_p5 = scmp.ne.s32.totalorder (!%p615_p3), %s3126_s24, 0 }
  0x14   : > { %s3262_s28 = scalar_select %p724_p4, %s3126_s24, 1 }
  0x15   : > { %s3680_s29 = sld [smem:[#allocation8_spill]] (!%p2708_p5) }
  0x16   : > { %s2773_s20 = sshll.u32 %s3262_s28, 4  ;;  %s748_s15 = scalar_lea.vmem %s3653_s8, %s3262_s28 }
  0x17   : > { %s3280_s27 = scalar_lea.vmem %s3678_s4, %s2773_s20  ;;  %s3285_s17 = scalar_lea.vmem %s3679_s6, %s2773_s20 }
  0x18   : > { %s751_s23 = scalar_lea.vmem %s3654_s9, %s3262_s28  ;;  %s3302_s4 = scalar_lea.vmem %s3655_s10, %s2773_s20 }
  0x19   : > { %s759_s6 = scalar_lea.vmem %s3656_s11, %s3262_s28  ;;  %s2776_s14 = sshll.u32 %s3262_s28, 6 }
  0x1a   : > { %s3312_s18 = scalar_lea.vmem %s3657_s12, %s2776_s14  ;;  %s767_s21 = scalar_lea.vmem %s3658_s13, %s3262_s28 }
  0x1b   : > { %777 = sbr.rel (%p2708_p5) target bundleno = 40 (0x28), region = 92  ;;  %s3681_s26 = sld [smem:[#allocation9_spill]] (!%p2708_p5) }
  0x20   : > { %v2782_v0 = vld [vmem:[%s3680_s29] sm:$0xff]   ;;  %vm782_vm0 = vcmask 261120   ;;  %v785_v1 = vlaneseq  ;;  %vm791_vm1 = vcmask 64512   ;;  %vm799_vm2 = vcmask 57344  }
  0x21   : > { %v2783_v2 = vunpack.c.l.bf16 %v2782_v0  ;;  %v2784_v3 = vunpack.c.h.bf16 %v2782_v0  ;;  %s3682_s16 = smov %s3681_s26  ;;  %v793_v4 = vld [vmem:[%s3681_s26] sm:$0x1]  ;;  %v3136_v12 = vmov -1e+09  }
  0x22   : > { %v794_v5 = vld [vmem:[%s3682_s16 + $0x1] sm:$0x1]  ;;  %v786_v6 = vshrl.u32 %v785_v1, 7  ;;  %v788_v7 = vand.u32 127, %v785_v1  ;;  %v2709_v8 = vadd.f32 -1.0, %v793_v4 }
  0x23   : > { %v2710_v9 = vadd.f32 -1.0, %v794_v5  ;;  %783 = vst.msk [vmem:[#allocation2] sm:$0xff] %vm782_vm0, %v2783_v2  ;;  %784 = vst.msk [vmem:[#allocation2 + $0x8] sm:$0xff] %vm782_vm0, %v2784_v3 }
  0x24   : > { %vm789_vm3 = vcmp.le.s32.totalorder %v788_v7, %v786_v6  ;;  %v797_v10 = vmul.f32 1e+09, %v2709_v8 }
  0x25   : > { %v798_v11 = vmul.f32 1e+09, %v2710_v9  ;;  %v790_v13 = vsel %vm789_vm3, 0.0, %v3136_v12 }
  0x26   : > { %792 = vst.msk [vmem:[#allocation3] sm:$0xff] %vm791_vm1, %v790_v13 }
  0x27   : > { %800 = vst.msk [vmem:[#allocation4] sm:$0x1] %vm799_vm2, %v797_v10  ;;  %801 = vst.msk [vmem:[#allocation4 + $0x1] sm:$0x1] %vm799_vm2, %v798_v11 }
  0x28 PF: > { %vm806_vm4 = vcmask 261120   ;;  %v3034_v28 = vld [vmem:[%s3280_s27 + $0x8] sm:$0xff]   ;;  %v3137_v29 = vmov 0.0   ;;  %vm3138_vm5 = vmmov 0   ;;  %v3035_v30 = vld [vmem:[%s3280_s27] sm:$0xff]   ;;  %s3683_s19 = scalar_lea.vmem %s3647_s2, %s3262_s28  ;;  %s3684_s29 = scalar_lea.vmem %s3648_s3, %s3262_s28  ;;  %vm944_vm6 = vcmask 64512  }
  0x29   : > { %2840 = vmatprep.subr.bf16.mxu1 %v3137_v29  ;;  %2844 = vmatprep.mubr.msk.bf16.mxu1 %vm3138_vm5, %v3137_v29  ;;  %v2711_v39 = vld [vmem:[%s3683_s19] ss:$0 sm:$0xff]  ;;  %s3685_s26 = scalar_lea.vmem %s3650_s5, %s3262_s28  ;;  %s3139_s14 = smov 96   ;;  %vm1081_vm7 = vcmask 1043456  }
  0x2a   : > { %v802_v14 = vld [vmem:[#allocation2] sm:$0xff]  ;;  %v803_v15 = vld [vmem:[#allocation2 + $0x8] sm:$0xff]  ;;  %2841 = vmatpush3.bf16.msra.mxu1 %v3034_v28  ;;  %2866 = vmatprep.subr.bf16.mxu0 %v3137_v29  ;;  %s3140_s30 = smov 64   ;;  %s3141_s27 = smov 88  }
  0x2b   : > { %v807_v16 = vsel %vm806_vm4, %v802_v14, 0.0  ;;  %v810_v17 = vsel %vm806_vm4, %v803_v15, 0.0  ;;  %2842 = vmatprep.subr.bf16.mxu1 %v3137_v29  ;;  %2868 = vmatprep.mubr.msk.bf16.mxu0 %vm3138_vm5, %v3137_v29  ;;  %v2712_v43 = vld [vmem:[%s3684_s29] ss:$0 sm:$0xff]  ;;  %s3142_s1 = smov 120   ;;  %s3143_s19 = smov 56  }
  0x2c   : > { %808 = vadd.xlane.f32.xlu0 %v807_v16  ;;  %v2713_v48 = vld [vmem:[%s3685_s26] ss:$0 sm:$0xff]  ;;  %s3144_s22 = smov 80   ;;  %s3145_s20 = smov 112  }
  0x2d   : > { %v924_v61 = vld [vmem:[#allocation3] sm:$0xff]  ;;  %s3146_s29 = smov 48   ;;  %s3147_s0 = smov 72  }
  0x2e   : > { %2843 = vmatpush3.bf16.msra.mxu1 %v3035_v30  ;;  %v2717_v62 = vld [vmem:[#allocation4] ss:$0 sm:$0xff]  ;;  %v2718_v5 = vld [vmem:[#allocation4 + $0x1] ss:$0 sm:$0xff]  ;;  %s3148_s25 = smov 104   ;;  %s3149_s26 = smov 40  }
  0x2f   : > { %2848 = vmatprep.subr.bf16.mxu1 %v3137_v29  ;;  %v3378_v63 = vadd.f32 %v2717_v62, %v924_v61  ;;  %v3382_v8 = vadd.f32 %v2718_v5, %v924_v61  ;;  %p2765_p6 = scmp.ne.s32.totalorder %s3126_s24, 1 }
  0x30   : > { %811 = vadd.xlane.f32.xlu0 %v810_v17 }
  0xb5   : > { %v809_v18 = vpop.xlane.xlu0 %808 }
  0xb6   : > { %v814_v19 = vmul.f32 0.03125, %v809_v18 }
  0xb8   : > { %v816_v20 = vsub.f32 %v802_v14, %v814_v19 }
  0xb9   : > { %v812_v21 = vpop.xlane.xlu0 %811 }
  0xba   : > { %v815_v22 = vmul.f32 0.03125, %v812_v21  ;;  %v818_v23 = vmul.f32 %v816_v20, %v816_v20 }
  0xbc   : > { %v817_v24 = vsub.f32 %v803_v15, %v815_v22  ;;  %v820_v25 = vsel %vm806_vm4, %v818_v23, 0.0 }
  0xbd   : > { %821 = vadd.xlane.f32.xlu1 %v820_v25 }
  0xbe   : > { %v819_v26 = vmul.f32 %v817_v24, %v817_v24 }
  0xc0   : > { %v823_v27 = vsel %vm806_vm4, %v819_v26, 0.0 }
  0xc1   : > { %824 = vadd.xlane.f32.xlu1 %v823_v27 }
 0x146   : > { %v822_v31 = vpop.xlane.xlu1 %821 }
 0x147   : > { %v826_v32 = vmul.f32 0.03125, %v822_v31 }
 0x149   : > { %v828_v33 = vadd.f32 1e-05, %v826_v32 }
 0x14a   : > { %v825_v34 = vpop.xlane.xlu1 %824 }
 0x14b   : > { %3046 = vrsqrt.f32 %v828_v33  ;;  %v827_v35 = vmul.f32 0.03125, %v825_v34 }
 0x14d   : > { %v829_v36 = vadd.f32 1e-05, %v827_v35 }
 0x14f   : > { %3048 = vrsqrt.f32 %v829_v36 }
 0x158   : > { %v3047_v37 = vpop.eup %3046 }
 0x159   : > { %v832_v38 = vmul.f32 %v3047_v37, %v816_v20 }
 0x15b   : > { %v840_v42 = vmul.f32 %v2711_v39, %v832_v38 }
 0x15c   : > { %v3049_v40 = vpop.eup %3048 }
 0x15d   : > { %v833_v41 = vmul.f32 %v3049_v40, %v817_v24  ;;  %v848_v45 = vadd.f32 %v2712_v43, %v840_v42 }
 0x15f   : > { %v841_v44 = vmul.f32 %v2711_v39, %v833_v41 }
 0x161   : > { %v849_v46 = vadd.f32 %v2712_v43, %v841_v44 }
 0x163   : > { %v850_v47 = vpack.c.bf16 %v849_v46, %v848_v45 }
 0x165   : > { %2845 = vmatmul.mubr.msk.bf16.vlgmr.msra.gmra.mxu1 %vm806_vm4, %v850_v47 }
 0x166   : > { %2850 = vmatprep.mubr.msk.bf16.mxu1 %vm3138_vm5, %v3137_v29 }
 0x225   : > { %v911_v49 = vpop.f32.mrf.mxu1 }
 0x226   : > { %v912_v50 = vadd.f32 %v2713_v48, %v911_v49 }
 0x227   : > { %v2846_v51 = vpop.f32.mrf.mxu1 }
 0x228   : > { %v3360_v52 = vpack.c.bf16 %v912_v50, %v912_v50 }
 0x229   : > { %v914_v53 = vpop.f32.mrf.mxu1 }
 0x22a   : > { %v915_v54 = vadd.f32 %v2713_v48, %v914_v53  ;;  %942 = vrot.lane.b32.xlu0 %v3360_v52, %s3139_s14 }
 0x22b   : > { %v2847_v55 = vpop.f32.mrf.mxu1 }
 0x22c   : > { %v3363_v56 = vpack.c.bf16 %v915_v54, %v915_v54 }
 0x22e   : > { %992 = vrot.lane.b32.xlu1 %v3363_v56, %s3139_s14 }
 0x29c   : > { %v943_v57 = vpop.permute.xlu0 %942 }
 0x29d   : > { %v949_v58 = vsel %vm944_vm6, %v943_v57, 0 }
 0x29e   : > { %2849 = vmatpush3.bf16.xpose.msra.mxu1 %v949_v58 }
 0x29f   : > { %2854 = vmatprep.subr.bf16.mxu1 %v3137_v29 }
 0x2a0   : > { %v993_v59 = vpop.permute.xlu1 %992 }
 0x2a1   : > { %v998_v60 = vsel %vm944_vm6, %v993_v59, 0 }
 0x2a5   : > { %2851 = vmatmul.mubr.msk.bf16.vlgmr.msra.gmra.mxu1 %vm944_vm6, %v3360_v52 }
 0x2a6   : > { %2855 = vmatpush3.bf16.xpose.msra.mxu1 %v998_v60  ;;  %2856 = vmatprep.mubr.msk.bf16.mxu1 %vm3138_vm5, %v3137_v29 }
 0x2a7   : > { %2860 = vmatprep.subr.bf16.mxu1 %v3137_v29 }
 0x2ad   : > { %2857 = vmatmul.mubr.msk.bf16.vlgmr.msra.gmra.mxu1 %vm944_vm6, %v3363_v56 }
 0x2ae   : > { %2862 = vmatprep.mubr.msk.bf16.mxu1 %vm3138_vm5, %v3137_v29 }
 0x365   : > { %v985_v0 = vpop.f32.mrf.mxu1 }
 0x366   : > { %v1040_v1 = vmul.f32 0.35355338, %v985_v0 }
 0x367   : > { %v2852_v2 = vpop.f32.mrf.mxu1 }
 0x368   : > { %v1042_v3 = vadd.f32 %v1040_v1, %v3378_v63 }
 0x369   : > { %v988_v4 = vpop.f32.mrf.mxu1 }
 0x36a   : > { %v1044_v6 = vsel %vm944_vm6, %v1042_v3, -inf }
 0x36b   : > { %1045 = vmax.xlane.f32.xlu1 %v1044_v6  ;;  %v2853_v7 = vpop.f32.mrf.mxu1 }
 0x36d   : > { %v1034_v9 = vpop.f32.mrf.mxu1 }
 0x36e   : > { %v1041_v10 = vmul.f32 0.35355338, %v1034_v9 }
 0x36f   : > { %v2858_v11 = vpop.f32.mrf.mxu1 }
 0x370   : > { %v1043_v12 = vadd.f32 %v1041_v10, %v3382_v8 }
 0x371   : > { %v1037_v13 = vpop.f32.mrf.mxu1 }
 0x372   : > { %v1047_v14 = vsel %vm944_vm6, %v1043_v12, -inf }
 0x373   : > { %1048 = vmax.xlane.f32.xlu0 %v1047_v14  ;;  %v2859_v15 = vpop.f32.mrf.mxu1 }
 0x37c   : > { %1125 = vrot.lane.b32.xlu1 %v3363_v56, %s3140_s30 }
 0x380   : > { %1200 = vrot.lane.b32.xlu1 %v3360_v52, %s3141_s27 }
 0x384   : > { %1250 = vrot.lane.b32.xlu1 %v3363_v56, %s3141_s27 }
 0x388   : > { %1248 = vrot.lane.b32.xlu1 %v3363_v56, %s3142_s1 }
 0x389   : > { %1076 = vrot.lane.b32.xlu0 %v3360_v52, %s3140_s30  ;;  %s3686_s30 = scalar_lea.vmem %s3652_s7, %s3262_s28 }
 0x38d   : > { %1198 = vrot.lane.b32.xlu0 %v3360_v52, %s3142_s1 }
 0x3f4   : > { %v1046_v16 = vpop.xlane.xlu1 %1045 }
 0x3f5   : > { %v1050_v17 = vmax.f32 %v1046_v16, -1e+30 }
 0x3f7   : > { %v1058_v18 = vsub.f32 %v1042_v3, %v1050_v17  ;;  %v1052_v39 = vsub.f32 -1e+30, %v1050_v17 }
 0x3f8   : > { %v1126_v19 = vpop.permute.xlu1 %1125 }
 0x3f9   : > { %v1060_v20 = vmul.f32 1.442695, %v1058_v18  ;;  %v1131_v21 = vsel %vm1081_vm7, %v1126_v19, 0  ;;  %v1054_v40 = vmul.f32 1.442695, %v1052_v39 }
 0x3fa   : > { %2867 = vmatpush3.bf16.msra.mxu0 %v1131_v21 }
 0x3fb   : > { %2878 = vmatprep.subr.bf16.mxu0 %v3137_v29  ;;  %3050 = vpow2.f32 %v1060_v20 }
 0x3fc   : > { %v1049_v22 = vpop.xlane.xlu0 %1048  ;;  %v1201_v30 = vpop.permute.xlu1 %1200 }
 0x3fd   : > { %v1051_v23 = vmax.f32 %v1049_v22, -1e+30  ;;  %v1206_v32 = vsel %vm944_vm6, %v1201_v30, 0 }
 0x3ff   : > { %v1059_v24 = vsub.f32 %v1043_v12, %v1051_v23  ;;  %v1053_v41 = vsub.f32 -1e+30, %v1051_v23 }
 0x400   : > { %v1077_v25 = vpop.permute.xlu0 %1076  ;;  %v1251_v34 = vpop.permute.xlu1 %1250 }
 0x401   : > { %v1062_v26 = vmul.f32 1.442695, %v1059_v24  ;;  %v1083_v27 = vsel %vm1081_vm7, %v1077_v25, 0  ;;  %v1256_v37 = vsel %vm944_vm6, %v1251_v34, 0  ;;  %v1056_v42 = vmul.f32 1.442695, %v1053_v41 }
 0x402   : > { %2861 = vmatpush3.bf16.msra.mxu1 %v1083_v27 }
 0x403   : > { %2872 = vmatprep.subr.bf16.mxu1 %v3137_v29  ;;  %3052 = vpow2.f32 %v1062_v26 }
 0x404   : > { %v1199_v36 = vpop.permute.xlu0 %1198  ;;  %v1249_v38 = vpop.permute.xlu1 %1248  ;;  %3054 = vpow2.f32 %v1054_v40 }
 0x405   : > { %3056 = vpow2.f32 %v1056_v42 }
 0x408   : > { %v3051_v28 = vpop.eup %3050 }
 0x409   : > { %v1074_v31 = vpack.c.bf16 %v3051_v28, %v3051_v28  ;;  %v1066_v11 = vsel %vm944_vm6, %v3051_v28, 0.0  ;;  %v918_v28 = vld [vmem:[%s3285_s17] sm:$0xf] }
 0x40b   : > { %2863 = vmatmul.mubr.msk.bf16.vlgmr.msra.gmra.mxu1 %vm944_vm6, %v1074_v31 }
 0x40c   : > { %2873 = vmatpush3.bf16.xpose.msra.mxu1 %v1206_v32  ;;  %2874 = vmatprep.mubr.msk.bf16.mxu1 %vm3138_vm5, %v3137_v29 }
 0x40d   : > { %2884 = vmatprep.subr.bf16.mxu1 %v3137_v29 }
 0x410   : > { %v3053_v33 = vpop.eup %3052 }
 0x411   : > { %v1075_v35 = vpack.c.bf16 %v3053_v33, %v3053_v33  ;;  %v3055_v43 = vpop.eup %3054  ;;  %v1069_v12 = vsel %vm944_vm6, %v3053_v33, 0.0  ;;  %v1499_v33 = vsel %vm1081_vm7, %v918_v28, 0 }
 0x412   : > { %v3412_v44 = vmul.f32 0.0, %v3055_v43  ;;  %v3057_v48 = vpop.eup %3056 }
 0x413   : > { %2869 = vmatmul.mubr.msk.bf16.vlgmr.msra.gmra.mxu0 %vm944_vm6, %v1075_v35  ;;  %2875 = vmatmul.mubr.msk.bf16.vlgmr.msra.gmra.mxu1 %vm944_vm6, %v1199_v36  ;;  %v3417_v51 = vmul.f32 0.0, %v3057_v48 }
 0x414   : > { %2879 = vmatpush3.bf16.xpose.msra.mxu0 %v1256_v37  ;;  %2880 = vmatprep.mubr.msk.bf16.mxu0 %vm3138_vm5, %v3137_v29 }
 0x415   : > { %2890 = vmatprep.subr.bf16.mxu0 %v3137_v29  ;;  %2886 = vmatprep.mubr.msk.bf16.mxu1 %vm3138_vm5, %v3137_v29 }
 0x41b   : > { %2881 = vmatmul.mubr.msk.bf16.vlgmr.msra.gmra.mxu0 %vm944_vm6, %v1249_v38 }
 0x41c   : > { %2892 = vmatprep.mubr.msk.bf16.mxu0 %vm3138_vm5, %v3137_v29 }
 0x4cb   : > { %v1119_v45 = vpop.f32.mrf.mxu1 }
 0x4cc   : > { %v3415_v46 = vadd.f32 %v1119_v45, %v3412_v44 }
 0x4cd   : > { %v2864_v47 = vpop.f32.mrf.mxu1 }
 0x4cf   : > { %v1122_v49 = vpop.f32.mrf.mxu1 }
 0x4d1   : > { %v2865_v50 = vpop.f32.mrf.mxu1 }
 0x4d3   : > { %v1167_v53 = vpop.f32.mrf.mxu0  ;;  %v1242_v54 = vpop.f32.mrf.mxu1 }
 0x4d4   : > { %v3420_v55 = vadd.f32 %v1167_v53, %v3417_v51  ;;  %v1298_v57 = vmul.f32 0.35355338, %v1242_v54 }
 0x4d5   : > { %v2870_v58 = vpop.f32.mrf.mxu0  ;;  %v2876_v59 = vpop.f32.mrf.mxu1 }
 0x4d6   : > { %v1300_v60 = vadd.f32 %v1298_v57, %v3378_v63 }
 0x4d7   : > { %v1170_v61 = vpop.f32.mrf.mxu0  ;;  %v1245_v62 = vpop.f32.mrf.mxu1 }
 0x4d8   : > { %v1302_v0 = vsel %vm944_vm6, %v1300_v60, -inf }
 0x4d9   : > { %v2871_v1 = vpop.f32.mrf.mxu0  ;;  %1303 = vmax.xlane.f32.xlu0 %v1302_v0  ;;  %v2877_v2 = vpop.f32.mrf.mxu1 }
 0x4db   : > { %v1292_v3 = vpop.f32.mrf.mxu0 }
 0x4dc   : > { %v1299_v4 = vmul.f32 0.35355338, %v1292_v3 }
 0x4dd   : > { %v2882_v5 = vpop.f32.mrf.mxu0 }
 0x4de   : > { %v1301_v6 = vadd.f32 %v1299_v4, %v3382_v8 }
 0x4df   : > { %v1295_v7 = vpop.f32.mrf.mxu0 }
 0x4e0   : > { %v1305_v9 = vsel %vm944_vm6, %v1301_v6, -inf }
 0x4e1   : > { %1306 = vmax.xlane.f32.xlu1 %v1305_v9  ;;  %v2883_v10 = vpop.f32.mrf.mxu0 }
 0x4ef   : > { %1334 = vrot.lane.b32.xlu0 %v3360_v52, %s3143_s19 }
 0x4f2   : > { %1382 = vrot.lane.b32.xlu1 %v3363_v56, %s3143_s19 }
 0x50e   : > { %1067 = vadd.xlane.f32.xlu0 %v1066_v11 }
 0x516   : > { %1070 = vadd.xlane.f32.xlu1 %v1069_v12 }
 0x527   : > { %1611 = vrot.lane.b32.xlu1 %v3363_v56, %s3144_s22 }
 0x52b   : > { %1559 = vrot.lane.b32.xlu1 %v3360_v52, %s3145_s20 }
 0x52f   : > { %1609 = vrot.lane.b32.xlu1 %v3363_v56, %s3145_s20 }
 0x562   : > { %v1304_v13 = vpop.xlane.xlu0 %1303 }
 0x563   : > { %v1308_v14 = vmax.f32 %v1304_v13, -1e+30 }
 0x565   : > { %v1316_v15 = vsub.f32 %v1300_v60, %v1308_v14  ;;  %v1310_v49 = vsub.f32 -1e+30, %v1308_v14 }
 0x566   : > { %v1335_v16 = vpop.permute.xlu0 %1334 }
 0x567   : > { %v1318_v17 = vmul.f32 1.442695, %v1316_v15  ;;  %v1340_v18 = vsel %vm1081_vm7, %v1335_v16, 0 }
 0x568   : > { %2885 = vmatpush3.bf16.msra.mxu1 %v1340_v18 }
 0x569   : > { %2896 = vmatprep.subr.bf16.mxu1 %v3137_v29  ;;  %3058 = vpow2.f32 %v1318_v17 }
 0x56a   : > { %v1307_v19 = vpop.xlane.xlu1 %1306 }
 0x56b   : > { %v1309_v20 = vmax.f32 %v1307_v19, -1e+30 }
 0x56d   : > { %v1317_v21 = vsub.f32 %v1301_v6, %v1309_v20  ;;  %v1311_v50 = vsub.f32 -1e+30, %v1309_v20 }
 0x56e   : > { %v1383_v22 = vpop.permute.xlu1 %1382 }
 0x56f   : > { %v1320_v23 = vmul.f32 1.442695, %v1317_v21  ;;  %v1388_v24 = vsel %vm1081_vm7, %v1383_v22, 0  ;;  %v1314_v53 = vmul.f32 1.442695, %v1311_v50 }
 0x570   : > { %2891 = vmatpush3.bf16.msra.mxu0 %v1388_v24 }
 0x571   : > { %2902 = vmatprep.subr.bf16.mxu0 %v3137_v29  ;;  %3060 = vpow2.f32 %v1320_v23 }
 0x576   : > { %v3059_v25 = vpop.eup %3058 }
 0x577   : > { %v1324_v26 = vsel %vm944_vm6, %v3059_v25, 0.0  ;;  %v1332_v27 = vpack.c.bf16 %v3059_v25, %v3059_v25 }
 0x578   : > { %1325 = vadd.xlane.f32.xlu0 %v1324_v26 }
 0x579   : > { %2887 = vmatmul.mubr.msk.bf16.vlgmr.msra.gmra.mxu1 %vm944_vm6, %v1332_v27 }
 0x57a   : > { %2898 = vmatprep.mubr.msk.bf16.mxu1 %vm3138_vm5, %v3137_v29 }
 0x57e   : > { %v3061_v30 = vpop.eup %3060 }
 0x57f   : > { %v1327_v31 = vsel %vm944_vm6, %v3061_v30, 0.0  ;;  %v1333_v32 = vpack.c.bf16 %v3061_v30, %v3061_v30 }
 0x580   : > { %1328 = vadd.xlane.f32.xlu0 %v1327_v31 }
 0x581   : > { %2893 = vmatmul.mubr.msk.bf16.vlgmr.msra.gmra.mxu0 %vm944_vm6, %v1333_v32 }
 0x582   : > { %2903 = vmatpush3.bf16.msra.mxu0 %v1499_v33  ;;  %2904 = vmatprep.mubr.msk.bf16.mxu0 %vm3138_vm5, %v3137_v29 }
 0x583   : > { %2914 = vmatprep.subr.bf16.mxu0 %v3137_v29 }
 0x596   : > { %1561 = vrot.lane.b32.xlu0 %v3360_v52, %s3144_s22 }
 0x597   : > { %v1068_v34 = vpop.xlane.xlu0 %1067 }
 0x598   : > { %v1072_v35 = vadd.f32 %v1068_v34, %v3412_v44 }
 0x59a   : > { %3062 = vrcp.f32 %v1072_v35 }
 0x59f   : > { %v1071_v36 = vpop.xlane.xlu1 %1070 }
 0x5a0   : > { %v1073_v37 = vadd.f32 %v1071_v36, %v3417_v51  ;;  %v1312_v51 = vmul.f32 1.442695, %v1310_v49 }
 0x5a2   : > { %3064 = vrcp.f32 %v1073_v37 }
 0x5a3   : > { %v1612_v41 = vpop.permute.xlu1 %1611  ;;  %3066 = vpow2.f32 %v1312_v51 }
 0x5a4   : > { %v1617_v45 = vsel %vm944_vm6, %v1612_v41, 0  ;;  %3068 = vpow2.f32 %v1314_v53 }
 0x5a7   : > { %v3063_v38 = vpop.eup %3062  ;;  %v1560_v47 = vpop.permute.xlu1 %1559 }
 0x5a8   : > { %v1177_v39 = vmul.f32 %v3063_v38, %v3415_v46  ;;  %v919_v46 = vld [vmem:[%s3285_s17 + $0x4] sm:$0xf] }
 0x5a9   : > { %v1447_v48 = vsel %vm1081_vm7, %v919_v46, 0 }
 0x5aa   : > { %2897 = vmatpush3.bf16.msra.mxu1 %v1447_v48 }
 0x5ab   : > { %v1610_v44 = vpop.permute.xlu1 %1609  ;;  %2908 = vmatprep.subr.bf16.mxu1 %v3137_v29 }
 0x5af   : > { %v3065_v40 = vpop.eup %3064 }
 0x5b0   : > { %v1178_v42 = vmul.f32 %v3065_v40, %v3420_v55  ;;  %v3067_v55 = vpop.eup %3066 }
 0x5b1   : > { %v3069_v57 = vpop.eup %3068  ;;  %v1322_v58 = vmul.f32 0.0, %v3067_v55 }
 0x5b2   : > { %v2778_v43 = vpack.c.bf16 %v1178_v42, %v1177_v39  ;;  %v1323_v60 = vmul.f32 0.0, %v3069_v57 }
 0x5b4   : > { %2905 = vmatmul.mubr.msk.bf16.vlgmr.msra.gmra.mxu0 %vm944_vm6, %v2778_v43 }
 0x5b5   : > { %2915 = vmatpush3.bf16.xpose.msra.mxu0 %v1617_v45  ;;  %2916 = vmatprep.mubr.msk.bf16.mxu0 %vm3138_vm5, %v3137_v29 }
 0x5b6   : > { %2926 = vmatprep.subr.bf16.mxu0 %v3137_v29 }
 0x5bc   : > { %2917 = vmatmul.mubr.msk.bf16.vlgmr.msra.gmra.mxu0 %vm944_vm6, %v1610_v44 }
 0x5bd   : > { %2928 = vmatprep.mubr.msk.bf16.mxu0 %vm3138_vm5, %v3137_v29 }
 0x601   : > { %v1326_v54 = vpop.xlane.xlu0 %1325 }
 0x602   : > { %v1330_v61 = vadd.f32 %v1326_v54, %v1322_v58 }
 0x604   : > { %3070 = vrcp.f32 %v1330_v61 }
 0x609   : > { %v1329_v59 = vpop.xlane.xlu0 %1328 }
 0x60a   : > { %v1331_v62 = vadd.f32 %v1329_v59, %v1323_v60 }
 0x60c   : > { %3072 = vrcp.f32 %v1331_v62 }
 0x60d   : > { %v1562_v13 = vpop.permute.xlu0 %1561 }
 0x60e   : > { %v1567_v17 = vsel %vm944_vm6, %v1562_v13, 0 }
 0x611   : > { %v3071_v6 = vpop.eup %3070 }
 0x619   : > { %v3073_v9 = vpop.eup %3072 }
 0x639   : > { %v1376_v0 = vpop.f32.mrf.mxu1 }
 0x63a   : > { %v1430_v4 = vadd.f32 %v1376_v0, %v1322_v58 }
 0x63b   : > { %v2888_v1 = vpop.f32.mrf.mxu1 }
 0x63c   : > { %v1434_v11 = vmul.f32 %v3071_v6, %v1430_v4 }
 0x63d   : > { %v1379_v2 = vpop.f32.mrf.mxu1 }
 0x63f   : > { %v2889_v3 = vpop.f32.mrf.mxu1 }
 0x641   : > { %v1424_v5 = vpop.f32.mrf.mxu0 }
 0x642   : > { %v1431_v7 = vadd.f32 %v1424_v5, %v1323_v60 }
 0x643   : > { %v2894_v10 = vpop.f32.mrf.mxu0 }
 0x644   : > { %v1435_v12 = vmul.f32 %v3073_v9, %v1431_v7 }
 0x645   : > { %v1427_v14 = vpop.f32.mrf.mxu0 }
 0x646   : > { %v2777_v15 = vpack.c.bf16 %v1435_v12, %v1434_v11  ;;  %v920_v12 = vld [vmem:[%s3285_s17 + $0x8] sm:$0xf] }
 0x647   : > { %v2895_v16 = vpop.f32.mrf.mxu0  ;;  %v1808_v13 = vsel %vm1081_vm7, %v920_v12, 0 }
 0x648   : > { %2899 = vmatmul.mubr.msk.bf16.vlgmr.msra.gmra.mxu1 %vm944_vm6, %v2777_v15 }
 0x649   : > { %2909 = vmatpush3.bf16.xpose.msra.mxu1 %v1567_v17  ;;  %2910 = vmatprep.mubr.msk.bf16.mxu1 %vm3138_vm5, %v3137_v29 }
 0x64a   : > { %2920 = vmatprep.subr.bf16.mxu1 %v3137_v29 }
 0x650   : > { %2911 = vmatmul.mubr.msk.bf16.vlgmr.msra.gmra.mxu1 %vm944_vm6, %v1560_v47 }
 0x651   : > { %2922 = vmatprep.mubr.msk.bf16.mxu1 %vm3138_vm5, %v3137_v29 }
 0x674   : > { %v3474_v18 = vpop.f32.mrf.mxu0 }
 0x676   : > { %v2906_v19 = vpop.f32.mrf.mxu0 }
 0x678   : > { %v3476_v20 = vpop.f32.mrf.mxu0 }
 0x67a   : > { %v2907_v21 = vpop.f32.mrf.mxu0 }
 0x67c   : > { %v1653_v22 = vpop.f32.mrf.mxu0 }
 0x67d   : > { %v1660_v23 = vmul.f32 0.35355338, %v1653_v22 }
 0x67e   : > { %v2918_v24 = vpop.f32.mrf.mxu0 }
 0x67f   : > { %v1662_v25 = vadd.f32 %v1660_v23, %v3382_v8 }
 0x680   : > { %v1656_v26 = vpop.f32.mrf.mxu0 }
 0x681   : > { %v1666_v27 = vsel %vm944_vm6, %v1662_v25, -inf }
 0x682   : > { %1667 = vmax.xlane.f32.xlu1 %v1666_v27  ;;  %v2919_v28 = vpop.f32.mrf.mxu0 }
 0x693   : > { %1743 = vrot.lane.b32.xlu1 %v3363_v56, %s3146_s29 }
 0x708   : > { %v3481_v30 = vpop.f32.mrf.mxu1 }
 0x70a   : > { %v2900_v31 = vpop.f32.mrf.mxu1 }
 0x70b   : > { %v1668_v32 = vpop.xlane.xlu1 %1667 }
 0x70c   : > { %v1670_v33 = vmax.f32 %v1668_v32, -1e+30  ;;  %v3483_v34 = vpop.f32.mrf.mxu1 }
 0x70e   : > { %v1678_v35 = vsub.f32 %v1662_v25, %v1670_v33  ;;  %v2901_v36 = vpop.f32.mrf.mxu1  ;;  %v1672_v61 = vsub.f32 -1e+30, %v1670_v33 }
 0x70f   : > { %v1744_v37 = vpop.permute.xlu1 %1743 }
 0x710   : > { %v1681_v38 = vmul.f32 1.442695, %v1678_v35  ;;  %v1749_v39 = vsel %vm1081_vm7, %v1744_v37, 0  ;;  %v1603_v40 = vpop.f32.mrf.mxu1  ;;  %v1675_v62 = vmul.f32 1.442695, %v1672_v61 }
 0x711   : > { %2927 = vmatpush3.bf16.msra.mxu0 %v1749_v39  ;;  %v1659_v41 = vmul.f32 0.35355338, %v1603_v40 }
 0x712   : > { %2938 = vmatprep.subr.bf16.mxu0 %v3137_v29  ;;  %3074 = vpow2.f32 %v1681_v38  ;;  %v2912_v42 = vpop.f32.mrf.mxu1 }
 0x713   : > { %v1661_v43 = vadd.f32 %v1659_v41, %v3378_v63 }
 0x714   : > { %v1606_v45 = vpop.f32.mrf.mxu1 }
 0x715   : > { %v1663_v47 = vsel %vm944_vm6, %v1661_v43, -inf }
 0x716   : > { %1664 = vmax.xlane.f32.xlu0 %v1663_v47  ;;  %v2913_v44 = vpop.f32.mrf.mxu1 }
 0x717   : > { %v1536_v44 = vadd.f32 %v3474_v18, %v3481_v30 }
 0x71f   : > { %v3075_v46 = vpop.eup %3074 }
 0x720   : > { %v1688_v48 = vsel %vm944_vm6, %v3075_v46, 0.0  ;;  %v1694_v49 = vpack.c.bf16 %v3075_v46, %v3075_v46 }
 0x721   : > { %1689 = vadd.xlane.f32.xlu1 %v1688_v48 }
 0x722   : > { %2929 = vmatmul.mubr.msk.bf16.vlgmr.msra.gmra.mxu0 %vm944_vm6, %v1694_v49 }
 0x723   : > { %2940 = vmatprep.mubr.msk.bf16.mxu0 %vm3138_vm5, %v3137_v29 }
 0x72c   : > { %1695 = vrot.lane.b32.xlu0 %v3360_v52, %s3146_s29  ;;  %s3688_s29 = sld [smem:[#allocation13_spill]] (!%p2765_p6) }
 0x732   : > { %1922 = vrot.lane.b32.xlu1 %v3363_v56, %s3147_s0 }
 0x736   : > { %1920 = vrot.lane.b32.xlu1 %v3363_v56, %s3148_s25 }
 0x79f   : > { %v1665_v50 = vpop.xlane.xlu0 %1664 }
 0x7a0   : > { %v1669_v51 = vmax.f32 %v1665_v50, -1e+30  ;;  %v1539_v50 = vadd.f32 %v3476_v20, %v3483_v34 }
 0x7a2   : > { %v1677_v53 = vsub.f32 %v1661_v43, %v1669_v51  ;;  %v1671_v19 = vsub.f32 -1e+30, %v1669_v51 }
 0x7a3   : > { %v1696_v54 = vpop.permute.xlu0 %1695 }
 0x7a4   : > { %v1679_v55 = vmul.f32 1.442695, %v1677_v53  ;;  %v1701_v57 = vsel %vm1081_vm7, %v1696_v54, 0  ;;  %v1673_v21 = vmul.f32 1.442695, %v1671_v19 }
 0x7a5   : > { %2921 = vmatpush3.bf16.msra.mxu1 %v1701_v57 }
 0x7a6   : > { %2932 = vmatprep.subr.bf16.mxu1 %v3137_v29  ;;  %3076 = vpow2.f32 %v1679_v55 }
 0x7a7   : > { %3078 = vpow2.f32 %v1675_v62 }
 0x7aa   : > { %v1690_v1 = vpop.xlane.xlu1 %1689 }
 0x7ae   : > { %v1923_v32 = vpop.permute.xlu1 %1922 }
 0x7af   : > { %v1928_v37 = vsel %vm944_vm6, %v1923_v32, 0 }
 0x7b2   : > { %v1921_v38 = vpop.permute.xlu1 %1920 }
 0x7b3   : > { %v3077_v58 = vpop.eup %3076 }
 0x7b4   : > { %v1685_v59 = vsel %vm944_vm6, %v3077_v58, 0.0  ;;  %v1693_v60 = vpack.c.bf16 %v3077_v58, %v3077_v58  ;;  %v3079_v0 = vpop.eup %3078 }
 0x7b5   : > { %1686 = vadd.xlane.f32.xlu0 %v1685_v59  ;;  %v1684_v2 = vmul.f32 0.0, %v3079_v0 }
 0x7b6   : > { %2923 = vmatmul.mubr.msk.bf16.vlgmr.msra.gmra.mxu1 %vm944_vm6, %v1693_v60 }
 0x7b7   : > { %2934 = vmatprep.mubr.msk.bf16.mxu1 %vm3138_vm5, %v3137_v29  ;;  %v1692_v3 = vadd.f32 %v1690_v1, %v1684_v2  ;;  %2933 = vmatpush3.bf16.msra.mxu1 %v1808_v13 }
 0x7b8   : > { %2944 = vmatprep.subr.bf16.mxu1 %v3137_v29 }
 0x7b9   : > { %3080 = vrcp.f32 %v1692_v3 }
 0x7ba   : > { %3082 = vpow2.f32 %v1673_v21 }
 0x7c6   : > { %v3081_v6 = vpop.eup %3080 }
 0x7c7   : > { %v3083_v22 = vpop.eup %3082 }
 0x7c8   : > { %v1683_v23 = vmul.f32 0.0, %v3083_v22 }
 0x7cb   : > { %1872 = vrot.lane.b32.xlu0 %v3360_v52, %s3147_s0 }
 0x7cf   : > { %1870 = vrot.lane.b32.xlu0 %v3360_v52, %s3148_s25 }
 0x7e2   : > { %v1785_v4 = vpop.f32.mrf.mxu0 }
 0x7e3   : > { %v1792_v5 = vadd.f32 %v1785_v4, %v1684_v2 }
 0x7e4   : > { %v2930_v7 = vpop.f32.mrf.mxu0 }
 0x7e5   : > { %v1796_v9 = vmul.f32 %v3081_v6, %v1792_v5 }
 0x7e6   : > { %v1788_v10 = vpop.f32.mrf.mxu0 }
 0x7e8   : > { %v2931_v11 = vpop.f32.mrf.mxu0 }
 0x7e9   : > { %v921_v11 = vld [vmem:[%s3285_s17 + $0xc] sm:$0xf] }
 0x7ea   : > { %v2119_v12 = vsel %vm1081_vm7, %v921_v11, 0 }
 0x83e   : > { %v1687_v14 = vpop.xlane.xlu0 %1686 }
 0x83f   : > { %v1691_v24 = vadd.f32 %v1687_v14, %v1683_v23 }
 0x841   : > { %3084 = vrcp.f32 %v1691_v24 }
 0x842   : > { %v1873_v15 = vpop.permute.xlu0 %1872 }
 0x843   : > { %v1878_v16 = vsel %vm944_vm6, %v1873_v15, 0 }
 0x844   : > { %2939 = vmatpush3.bf16.xpose.msra.mxu0 %v1878_v16 }
 0x845   : > { %2950 = vmatprep.subr.bf16.mxu0 %v3137_v29 }
 0x846   : > { %v1871_v17 = vpop.permute.xlu0 %1870 }
 0x84b   : > { %2941 = vmatmul.mubr.msk.bf16.vlgmr.msra.gmra.mxu0 %vm944_vm6, %v1871_v17 }
 0x84c   : > { %2952 = vmatprep.mubr.msk.bf16.mxu0 %vm3138_vm5, %v3137_v29 }
 0x84e   : > { %v3085_v27 = vpop.eup %3084 }
 0x876   : > { %v1737_v25 = vpop.f32.mrf.mxu1 }
 0x877   : > { %v1791_v26 = vadd.f32 %v1737_v25, %v1683_v23 }
 0x878   : > { %v2924_v28 = vpop.f32.mrf.mxu1 }
 0x879   : > { %v1795_v31 = vmul.f32 %v3085_v27, %v1791_v26 }
 0x87a   : > { %v1740_v33 = vpop.f32.mrf.mxu1 }
 0x87b   : > { %v2779_v35 = vpack.c.bf16 %v1796_v9, %v1795_v31 }
 0x87c   : > { %v2925_v36 = vpop.f32.mrf.mxu1 }
 0x87d   : > { %2935 = vmatmul.mubr.msk.bf16.vlgmr.msra.gmra.mxu1 %vm944_vm6, %v2779_v35 }
 0x87e   : > { %2945 = vmatpush3.bf16.xpose.msra.mxu1 %v1928_v37  ;;  %2946 = vmatprep.mubr.msk.bf16.mxu1 %vm3138_vm5, %v3137_v29 }
 0x87f   : > { %2956 = vmatprep.subr.bf16.mxu1 %v3137_v29 }
 0x885   : > { %2947 = vmatmul.mubr.msk.bf16.vlgmr.msra.gmra.mxu1 %vm944_vm6, %v1921_v38 }
 0x886   : > { %2958 = vmatprep.mubr.msk.bf16.mxu1 %vm3138_vm5, %v3137_v29 }
 0x90b   : > { %v1914_v39 = vpop.f32.mrf.mxu0 }
 0x90c   : > { %v1970_v40 = vmul.f32 0.35355338, %v1914_v39 }
 0x90d   : > { %v2942_v41 = vpop.f32.mrf.mxu0 }
 0x90e   : > { %v1972_v42 = vadd.f32 %v1970_v40, %v3378_v63 }
 0x90f   : > { %v1917_v43 = vpop.f32.mrf.mxu0 }
 0x910   : > { %v1974_v45 = vsel %vm944_vm6, %v1972_v42, -inf }
 0x911   : > { %1975 = vmax.xlane.f32.xlu0 %v1974_v45  ;;  %v2943_v47 = vpop.f32.mrf.mxu0 }
 0x927   : > { %2006 = vrot.lane.b32.xlu0 %v3360_v52, %s3149_s26 }
 0x93d   : > { %v1844_v46 = vpop.f32.mrf.mxu1 }
 0x93e   : > { %v3525_v48 = vadd.f32 %v1844_v46, %v1536_v44  ;;  %v2749_v46 = vld [vmem:[%s3686_s30] ss:$0 sm:$0xff]  ;;  %s3690_s30 = sld [smem:[#allocation15_spill]] (!%p2765_p6) }
 0x93f   : > { %v2936_v49 = vpop.f32.mrf.mxu1 }
 0x941   : > { %v1847_v51 = vpop.f32.mrf.mxu1 }
 0x942   : > { %v3529_v63 = vadd.f32 %v1847_v51, %v1539_v50  ;;  %v3106_v50 = vld [vmem:[#allocation2] sm:$0xff] }
 0x943   : > { %v2937_v53 = vpop.f32.mrf.mxu1 }
 0x945   : > { %v1964_v54 = vpop.f32.mrf.mxu1 }
 0x946   : > { %v1971_v55 = vmul.f32 0.35355338, %v1964_v54 }
 0x947   : > { %v2948_v57 = vpop.f32.mrf.mxu1 }
 0x948   : > { %v1973_v58 = vadd.f32 %v1971_v55, %v3382_v8 }
 0x949   : > { %v1967_v52 = vpop.f32.mrf.mxu1 }
 0x94a   : > { %v1977_v59 = vsel %vm944_vm6, %v1973_v58, -inf }
 0x94b   : > { %1978 = vmax.xlane.f32.xlu1 %v1977_v59  ;;  %v2949_v18 = vpop.f32.mrf.mxu1 }
 0x95c   : > { %2054 = vrot.lane.b32.xlu1 %v3363_v56, %s3149_s26  ;;  %s3689_s26 = sld [smem:[#allocation14_spill]] (!%p2765_p6) }
 0x99a   : > { %v1976_v30 = vpop.xlane.xlu0 %1975 }
 0x99b   : > { %v1980_v60 = vmax.f32 %v1976_v30, -1e+30 }
 0x99d   : > { %v1988_v61 = vsub.f32 %v1972_v42, %v1980_v60  ;;  %v1982_v17 = vsub.f32 -1e+30, %v1980_v60 }
 0x99e   : > { %v2007_v20 = vpop.permute.xlu0 %2006 }
 0x99f   : > { %v1990_v34 = vmul.f32 1.442695, %v1988_v61  ;;  %v2012_v62 = vsel %vm1081_vm7, %v2007_v20, 0  ;;  %v1984_v21 = vmul.f32 1.442695, %v1982_v17 }
 0x9a0   : > { %2951 = vmatpush3.bf16.msra.mxu0 %v2012_v62 }
 0x9a1   : > { %2962 = vmatprep.subr.bf16.mxu0 %v3137_v29  ;;  %3086 = vpow2.f32 %v1990_v34 }
 0x9ae   : > { %v3087_v0 = vpop.eup %3086 }
 0x9af   : > { %v1996_v8 = vsel %vm944_vm6, %v3087_v0, 0.0  ;;  %v2004_v1 = vpack.c.bf16 %v3087_v0, %v3087_v0 }
 0x9b0   : > { %1997 = vadd.xlane.f32.xlu0 %v1996_v8 }
 0x9b1   : > { %2953 = vmatmul.mubr.msk.bf16.vlgmr.msra.gmra.mxu0 %vm944_vm6, %v2004_v1 }
 0x9b2   : > { %2964 = vmatprep.mubr.msk.bf16.mxu0 %vm3138_vm5, %v3137_v29  ;;  %2963 = vmatpush3.bf16.msra.mxu0 %v2119_v12  ;;  %v2750_v12 = vld [vmem:[%s748_s15] ss:$0 sm:$0xff] }
 0x9b3   : > { %2976 = vmatprep.subr.bf16.mxu0 %v3137_v29 }
 0x9d4   : > { %v1979_v56 = vpop.xlane.xlu1 %1978 }
 0x9d5   : > { %v1981_v2 = vmax.f32 %v1979_v56, -1e+30  ;;  %v3036_v56 = vld [vmem:[%s3302_s4 + $0x8] sm:$0xff]  }
 0x9d7   : > { %v1989_v3 = vsub.f32 %v1973_v58, %v1981_v2  ;;  %v1983_v19 = vsub.f32 -1e+30, %v1981_v2  ;;  %v3107_v58 = vld [vmem:[#allocation2 + $0x8] sm:$0xff]  ;;  %v3037_v2 = vld [vmem:[%s3302_s4] sm:$0xff]  }
 0x9d8   : > { %v2055_v4 = vpop.permute.xlu1 %2054 }
 0x9d9   : > { %v1992_v5 = vmul.f32 1.442695, %v1989_v3  ;;  %v2060_v6 = vsel %vm1081_vm7, %v2055_v4, 0  ;;  %v1986_v22 = vmul.f32 1.442695, %v1983_v19 }
 0x9da   : > { %2957 = vmatpush3.bf16.msra.mxu1 %v2060_v6 }
 0x9db   : > { %2968 = vmatprep.subr.bf16.mxu1 %v3137_v29  ;;  %3088 = vpow2.f32 %v1992_v5 }
 0x9dc   : > { %3090 = vpow2.f32 %v1984_v21 }
 0x9dd   : > { %3092 = vpow2.f32 %v1986_v22 }
 0x9e8   : > { %v3089_v7 = vpop.eup %3088 }
 0x9e9   : > { %v1999_v9 = vsel %vm944_vm6, %v3089_v7, 0.0  ;;  %v2005_v10 = vpack.c.bf16 %v3089_v7, %v3089_v7  ;;  %v3091_v23 = vpop.eup %3090 }
 0x9ea   : > { %2000 = vadd.xlane.f32.xlu1 %v1999_v9  ;;  %v3093_v24 = vpop.eup %3092  ;;  %v1994_v26 = vmul.f32 0.0, %v3091_v23  ;;  %v3038_v23 = vld [vmem:[%s3312_s18 + $0x38] sm:$0xff]  }
 0x9eb   : > { %2959 = vmatmul.mubr.msk.bf16.vlgmr.msra.gmra.mxu1 %vm944_vm6, %v2005_v10  ;;  %v1995_v28 = vmul.f32 0.0, %v3093_v24  ;;  %v3039_v24 = vld [vmem:[%s3312_s18 + $0x30] sm:$0xff]  }
 0x9ec   : > { %2972 = vmatprep.mubr.msk.bf16.mxu1 %vm3138_vm5, %v3137_v29  ;;  %2969 = vmatpush3.bf16.msra.mxu1 %v3036_v56 }
 0x9ed   : > { %2970 = vmatprep.subr.bf16.mxu1 %v3137_v29 }
 0x9f0   : > { %2971 = vmatpush3.bf16.msra.mxu1 %v3037_v2 }
 0xa39   : > { %v1998_v25 = vpop.xlane.xlu0 %1997 }
 0xa3a   : > { %v2002_v31 = vadd.f32 %v1998_v25, %v1994_v26  ;;  %v3040_v25 = vld [vmem:[%s3312_s18 + $0x28] sm:$0xff]  }
 0xa3c   : > { %3094 = vrcp.f32 %v2002_v31  ;;  %v3044_v31 = vld [vmem:[%s3312_s18 + $0x8] sm:$0xff]  }
 0xa49   : > { %v3095_v36 = vpop.eup %3094 }
 0xa71   : > { %v2048_v13 = vpop.f32.mrf.mxu0 }
 0xa72   : > { %v2102_v33 = vadd.f32 %v2048_v13, %v1994_v26  ;;  %v3041_v26 = vld [vmem:[%s3312_s18 + $0x20] sm:$0xff]  }
 0xa73   : > { %v2954_v14 = vpop.f32.mrf.mxu0  ;;  %v2001_v27 = vpop.xlane.xlu1 %2000 }
 0xa74   : > { %v2003_v32 = vadd.f32 %v2001_v27, %v1995_v28  ;;  %v2106_v40 = vmul.f32 %v3095_v36, %v2102_v33  ;;  %v3042_v27 = vld [vmem:[%s3312_s18 + $0x18] sm:$0xff]   ;;  %v2752_v33 = vld [vmem:[%s759_s6] ss:$0 sm:$0xff] }
 0xa75   : > { %v2051_v15 = vpop.f32.mrf.mxu0 }
 0xa76   : > { %3096 = vrcp.f32 %v2003_v32  ;;  %v3045_v32 = vld [vmem:[%s3312_s18] sm:$0xff]  }
 0xa77   : > { %v2955_v16 = vpop.f32.mrf.mxu0 }
 0xa78   : > { %v2751_v16 = vld [vmem:[%s751_s23] ss:$0 sm:$0xff] }
 0xa83   : > { %v3097_v38 = vpop.eup %3096 }
 0xaab   : > { %v2096_v35 = vpop.f32.mrf.mxu1 }
 0xaac   : > { %v2103_v37 = vadd.f32 %v2096_v35, %v1995_v28  ;;  %v3043_v28 = vld [vmem:[%s3312_s18 + $0x10] sm:$0xff]  }
 0xaad   : > { %v2960_v39 = vpop.f32.mrf.mxu1 }
 0xaae   : > { %v2107_v41 = vmul.f32 %v3097_v38, %v2103_v37 }
 0xaaf   : > { %v2099_v42 = vpop.f32.mrf.mxu1 }
 0xab0   : > { %v2780_v43 = vpack.c.bf16 %v2107_v41, %v2106_v40 }
 0xab1   : > { %v2961_v45 = vpop.f32.mrf.mxu1 }
 0xab2   : > { %2965 = vmatmul.mubr.msk.bf16.vlgmr.msra.gmra.mxu0 %vm944_vm6, %v2780_v43 }
 0xab3   : > { %2992 = vmatprep.mubr.msk.bf16.mxu0 %vm3138_vm5, %v3137_v29  ;;  %2977 = vmatpush3.bf16.msra.mxu0 %v3038_v23 }
 0xab4   : > { %2978 = vmatprep.subr.bf16.mxu0 %v3137_v29 }
 0xab7   : > { %2979 = vmatpush3.bf16.msra.mxu0 %v3039_v24 }
 0xab8   : > { %2980 = vmatprep.subr.bf16.mxu0 %v3137_v29 }
 0xabb   : > { %2981 = vmatpush3.bf16.msra.mxu0 %v3040_v25 }
 0xabc   : > { %2982 = vmatprep.subr.bf16.mxu0 %v3137_v29 }
 0xabf   : > { %2983 = vmatpush3.bf16.msra.mxu0 %v3041_v26 }
 0xac0   : > { %2984 = vmatprep.subr.bf16.mxu0 %v3137_v29 }
 0xac3   : > { %2985 = vmatpush3.bf16.msra.mxu0 %v3042_v27 }
 0xac4   : > { %2986 = vmatprep.subr.bf16.mxu0 %v3137_v29 }
 0xac7   : > { %2987 = vmatpush3.bf16.msra.mxu0 %v3043_v28 }
 0xac8   : > { %2988 = vmatprep.subr.bf16.mxu0 %v3137_v29 }
 0xacb   : > { %2989 = vmatpush3.bf16.msra.mxu0 %v3044_v31 }
 0xacc   : > { %2990 = vmatprep.subr.bf16.mxu0 %v3137_v29 }
 0xacf   : > { %2991 = vmatpush3.bf16.msra.mxu0 %v3045_v32 }
 0xb72   : > { %v2155_v47 = vpop.f32.mrf.mxu0 }
 0xb73   : > { %v2162_v44 = vadd.f32 %v2155_v47, %v3525_v48 }
 0xb74   : > { %v2966_v49 = vpop.f32.mrf.mxu0 }
 0xb75   : > { %v2164_v51 = vadd.f32 %v3106_v50, %v2162_v44 }
 0xb76   : > { %v2158_v53 = vpop.f32.mrf.mxu0 }
 0xb77   : > { %v3558_v54 = vadd.f32 %v2749_v46, %v2164_v51  ;;  %v2163_v55 = vadd.f32 %v2158_v53, %v3529_v63 }
 0xb78   : > { %v2967_v57 = vpop.f32.mrf.mxu0 }
 0xb79   : > { %v2165_v52 = vadd.f32 %v3107_v58, %v2163_v55  ;;  %v2177_v59 = vsel %vm806_vm4, %v3558_v54, 0.0 }
 0xb7a   : > { %2178 = vadd.xlane.f32.xlu0 %v2177_v59 }
 0xb7b   : > { %v3563_v48 = vadd.f32 %v2749_v46, %v2165_v52 }
 0xb7d   : > { %v2180_v18 = vsel %vm806_vm4, %v3563_v48, 0.0 }
 0xb7e   : > { %2181 = vadd.xlane.f32.xlu0 %v2180_v18 }
 0xc03   : > { %v2179_v30 = vpop.xlane.xlu0 %2178 }
 0xc04   : > { %v2183_v60 = vmul.f32 0.03125, %v2179_v30 }
 0xc06   : > { %v2185_v61 = vsub.f32 %v3558_v54, %v2183_v60  ;;  %v2756_v60 = vld [vmem:[%s767_s21] ss:$0 sm:$0xff]  ;;  %s3687_s21 = sld [smem:[#allocation12_spill]] (!%p2765_p6) }
 0xc07   : > { %v2182_v63 = vpop.xlane.xlu0 %2181 }
 0xc08   : > { %v2184_v20 = vmul.f32 0.03125, %v2182_v63  ;;  %v2187_v34 = vmul.f32 %v2185_v61, %v2185_v61 }
 0xc0a   : > { %v2186_v62 = vsub.f32 %v3563_v48, %v2184_v20  ;;  %v2189_v0 = vsel %vm806_vm4, %v2187_v34, 0.0 }
 0xc0b   : > { %2190 = vadd.xlane.f32.xlu0 %v2189_v0 }
 0xc0c   : > { %v2188_v8 = vmul.f32 %v2186_v62, %v2186_v62 }
 0xc0e   : > { %v2192_v1 = vsel %vm806_vm4, %v2188_v8, 0.0 }
 0xc0f   : > { %2193 = vadd.xlane.f32.xlu1 %v2192_v1 }
 0xc94   : > { %v2191_v3 = vpop.xlane.xlu0 %2190 }
 0xc95   : > { %v2195_v4 = vmul.f32 0.03125, %v2191_v3 }
 0xc97   : > { %v2197_v5 = vadd.f32 1e-05, %v2195_v4 }
 0xc98   : > { %v2194_v6 = vpop.xlane.xlu1 %2193 }
 0xc99   : > { %3098 = vrsqrt.f32 %v2197_v5  ;;  %v2196_v7 = vmul.f32 0.03125, %v2194_v6 }
 0xc9b   : > { %v2198_v9 = vadd.f32 1e-05, %v2196_v7 }
 0xc9d   : > { %3100 = vrsqrt.f32 %v2198_v9 }
 0xca6   : > { %v3099_v10 = vpop.eup %3098 }
 0xca7   : > { %v2201_v11 = vmul.f32 %v3099_v10, %v2185_v61 }
 0xca9   : > { %v2209_v15 = vmul.f32 %v2750_v12, %v2201_v11 }
 0xcaa   : > { %v3101_v13 = vpop.eup %3100 }
 0xcab   : > { %v2202_v14 = vmul.f32 %v3101_v13, %v2186_v62  ;;  %v2217_v19 = vadd.f32 %v2751_v16, %v2209_v15 }
 0xcad   : > { %v2210_v17 = vmul.f32 %v2750_v12, %v2202_v14 }
 0xcaf   : > { %v2218_v21 = vadd.f32 %v2751_v16, %v2210_v17 }
 0xcb1   : > { %v2219_v22 = vpack.c.bf16 %v2218_v21, %v2217_v19 }
 0xcb3   : > { %2973 = vmatmul.mubr.msk.bf16.vlgmr.msra.gmra.mxu1 %vm806_vm4, %v2219_v22 }
 0xd73   : > { %v2280_v35 = vpop.f32.mrf.mxu1 }
 0xd74   : > { %v2281_v36 = vadd.f32 %v2752_v33, %v2280_v35 }
 0xd75   : > { %v2974_v37 = vpop.f32.mrf.mxu1 }
 0xd76   : > { %v2287_v38 = vmul.f32 %v2281_v36, %v2281_v36 }
 0xd77   : > { %v2283_v39 = vpop.f32.mrf.mxu1 }
 0xd78   : > { %v2289_v40 = vmul.f32 %v2287_v38, %v2281_v36  ;;  %v2284_v41 = vadd.f32 %v2752_v33, %v2283_v39 }
 0xd79   : > { %v2975_v42 = vpop.f32.mrf.mxu1 }
 0xd7a   : > { %v2291_v43 = vmul.f32 0.044715, %v2289_v40  ;;  %v2288_v45 = vmul.f32 %v2284_v41, %v2284_v41 }
 0xd7c   : > { %v2293_v47 = vadd.f32 %v2291_v43, %v2281_v36  ;;  %v2290_v44 = vmul.f32 %v2288_v45, %v2284_v41 }
 0xd7e   : > { %v2295_v29 = vmul.f32 0.7978846, %v2293_v47  ;;  %v2292_v46 = vmul.f32 0.044715, %v2290_v44 }
 0xd80   : > { %3102 = vtanh.f32 %v2295_v29  ;;  %v2294_v49 = vadd.f32 %v2292_v46, %v2284_v41 }
 0xd82   : > { %v2296_v50 = vmul.f32 0.7978846, %v2294_v49 }
 0xd84   : > { %3104 = vtanh.f32 %v2296_v50 }
 0xd8d   : > { %v3103_v51 = vpop.eup %3102 }
 0xd8e   : > { %v2299_v53 = vadd.f32 1.0, %v3103_v51 }
 0xd90   : > { %v2301_v57 = vmul.f32 0.5, %v2299_v53 }
 0xd91   : > { %v3105_v55 = vpop.eup %3104 }
 0xd92   : > { %v2300_v58 = vadd.f32 1.0, %v3105_v55  ;;  %v2303_v59 = vmul.f32 %v2301_v57, %v2281_v36 }
 0xd94   : > { %v2302_v52 = vmul.f32 0.5, %v2300_v58 }
 0xd96   : > { %v2304_v18 = vmul.f32 %v2302_v52, %v2284_v41 }
 0xd98   : > { %v2305_v30 = vpack.c.bf16 %v2304_v18, %v2303_v59 }
 0xd9a   : > { %2993 = vmatmul.mubr.bf16.vlgmr.msra.gmra.mxu0 %v2305_v30 }
 0xe5a   : > { %v2411_v61 = vpop.f32.mrf.mxu0 }
 0xe5b   : > { %v2412_v63 = vadd.f32 %v2756_v60, %v2411_v61 }
 0xe5c   : > { %v2994_v20 = vpop.f32.mrf.mxu0 }
 0xe5d   : > { %v2418_v34 = vadd.f32 %v2412_v63, %v3558_v54 }
 0xe5e   : > { %v2414_v62 = vpop.f32.mrf.mxu0 }
 0xe5f   : > { %2420 = vst.msk [vmem:[#allocation2] sm:$0xff] %vm806_vm4, %v2418_v34  ;;  %v2415_v0 = vadd.f32 %v2756_v60, %v2414_v62  ;;  %2425 = sbr.rel (%p2765_p6) target bundleno = 4152 (0x1038), region = 96 }
 0xe60   : > { %v2995_v8 = vpop.f32.mrf.mxu0 }
 0xe61   : > { %v2419_v1 = vadd.f32 %v2415_v0, %v3563_v48 }
 0xe63   : > { %2421 = vst.msk [vmem:[#allocation2 + $0x8] sm:$0xff] %vm806_vm4, %v2419_v1 }
 0xe64   : > { %v2428_v56 = vsel %vm806_vm4, %v2418_v34, 0.0  ;;  %v2431_v2 = vsel %vm806_vm4, %v2419_v1, 0.0  ;;  %v2766_v21 = vld [vmem:[%s3687_s21] ss:$0 sm:$0xff]  ;;  %vm2500_vm8 = vcmask 0  }
 0xe65   : > { %2429 = vadd.xlane.f32.xlu0 %v2428_v56  ;;  %v2767_v23 = vld [vmem:[%s3688_s29] ss:$0 sm:$0xff] }
 0xe66   : > { %v2768_v26 = vld [vmem:[%s3689_s26] ss:$0 sm:$0xff] }
 0xe69   : > { %2432 = vadd.xlane.f32.xlu0 %v2431_v2 }
 0xeee   : > { %v2430_v3 = vpop.xlane.xlu0 %2429 }
 0xeef   : > { %v2434_v54 = vmul.f32 0.03125, %v2430_v3 }
 0xef1   : > { %v2436_v4 = vsub.f32 %v2418_v34, %v2434_v54 }
 0xef2   : > { %v2433_v5 = vpop.xlane.xlu0 %2432 }
 0xef3   : > { %v2435_v6 = vmul.f32 0.03125, %v2433_v5  ;;  %v2438_v7 = vmul.f32 %v2436_v4, %v2436_v4 }
 0xef5   : > { %v2437_v9 = vsub.f32 %v2419_v1, %v2435_v6  ;;  %v2440_v48 = vsel %vm806_vm4, %v2438_v7, 0.0 }
 0xef6   : > { %2441 = vadd.xlane.f32.xlu1 %v2440_v48 }
 0xef7   : > { %v2439_v10 = vmul.f32 %v2437_v9, %v2437_v9 }
 0xef9   : > { %v2443_v11 = vsel %vm806_vm4, %v2439_v10, 0.0 }
 0xefa   : > { %2444 = vadd.xlane.f32.xlu1 %v2443_v11 }
 0xf7f   : > { %v2442_v12 = vpop.xlane.xlu1 %2441 }
 0xf80   : > { %v2446_v13 = vmul.f32 0.03125, %v2442_v12 }
 0xf82   : > { %v2448_v14 = vadd.f32 1e-05, %v2446_v13 }
 0xf83   : > { %v2445_v15 = vpop.xlane.xlu1 %2444 }
 0xf84   : > { %3108 = vrsqrt.f32 %v2448_v14  ;;  %v2447_v16 = vmul.f32 0.03125, %v2445_v15 }
 0xf86   : > { %v2449_v17 = vadd.f32 1e-05, %v2447_v16 }
 0xf88   : > { %3110 = vrsqrt.f32 %v2449_v17 }
 0xf91   : > { %v3109_v19 = vpop.eup %3108 }
 0xf92   : > { %v2452_v22 = vmul.f32 %v3109_v19, %v2436_v4 }
 0xf94   : > { %v2460_v24 = vmul.f32 %v2766_v21, %v2452_v22 }
 0xf95   : > { %v3111_v25 = vpop.eup %3110 }
 0xf96   : > { %v2468_v27 = vadd.f32 %v2767_v23, %v2460_v24  ;;  %v2453_v28 = vmul.f32 %v3111_v25, %v2437_v9 }
 0xf98   : > { %v2477_v31 = vmul.f32 %v2768_v26, %v2468_v27  ;;  %v2461_v32 = vmul.f32 %v2766_v21, %v2453_v28 }
 0xf9a   : > { %v2479_v33 = vsel %vm806_vm4, %v2477_v31, 0.0  ;;  %v2469_v35 = vadd.f32 %v2767_v23, %v2461_v32 }
 0xf9b   : > { %2480 = vadd.xlane.f32.xlu0 %v2479_v33 }
 0xf9c   : > { %v2478_v36 = vmul.f32 %v2768_v26, %v2469_v35 }
 0xf9e   : > { %v2482_v37 = vsel %vm806_vm4, %v2478_v36, 0.0 }
 0xf9f   : > { %2483 = vadd.xlane.f32.xlu1 %v2482_v37 }
0x1024   : > { %v2481_v38 = vpop.xlane.xlu0 %2480 }
0x1025   : > { %v2485_v39 = vrot.slane %v2481_v38, 4 }
0x1027   : > { %v2486_v40 = vadd.f32 %v2485_v39, %v2481_v38 }
0x1028   : > { %v2484_v41 = vpop.xlane.xlu1 %2483 }
0x1029   : > { %v2487_v42 = vrot.slane %v2486_v40, 2  ;;  %v2491_v43 = vrot.slane %v2484_v41, 4 }
0x102b   : > { %v2488_v45 = vadd.f32 %v2487_v42, %v2486_v40  ;;  %v2492_v47 = vadd.f32 %v2491_v43, %v2484_v41 }
0x102d   : > { %v2489_v44 = vrot.slane %v2488_v45, 1  ;;  %v2493_v29 = vrot.slane %v2492_v47, 2 }
0x102f   : > { %v2490_v46 = vadd.f32 %v2489_v44, %v2488_v45  ;;  %v2494_v49 = vadd.f32 %v2493_v29, %v2492_v47 }
0x1031   : > { %v2498_v50 = vmul.f32 0.125, %v2490_v46  ;;  %v2495_v51 = vrot.slane %v2494_v49, 1 }
0x1033   : > { %2501 = vst.msk [vmem:[%s3690_s30] sm:$0x1] %vm2500_vm8, %v2498_v50  ;;  %v2496_v53 = vadd.f32 %v2495_v51, %v2494_v49 }
0x1035   : > { %v2499_v55 = vmul.f32 0.125, %v2496_v53 }
0x1037   : > { %2502 = vst.msk [vmem:[%s3690_s30 + $0x1] sm:$0x1] %vm2500_vm8, %v2499_v55 }
0x1038 PF: > { %s3691_s4 = sld [smem:[#allocation6_spill]] }
0x1039   : > { %s3692_s24 = sld [smem:[#allocation5_spill]] }
0x103a   : > { %s3693_s25 = sld [smem:[#allocation7_spill]] }
0x103e   : > { %s27_s26 = sadd.s32 1, %s3691_s4  }
0x103f   : > { %p24_p7 = scmp.ge.s32.totalorder %s27_s26, 4  }
0x1041   :  { %26 = sbr.rel (!%p24_p7) target bundleno = 9 (0x9), region = 165 }

</bundles_post_ra>
